<compile_context>
chip_gen: v7x
topology: tpu7x:2x2x1
jax: 0.10.0
libtpu: 0.0.40
codegen_flags: <defaults>
</compile_context>

<pallas_src>
import jax
import jax.numpy as jnp
from jax import lax
from jax.experimental import pallas as pl
from jax.experimental.pallas import tpu as pltpu

COUT = 64


def _cdiv(a, b):
    return -(-a // b)


def _device_kind():
    try:
        return jax.devices()[0].device_kind.lower()
    except Exception:
        return ""


def _make_kernel(B, H, W, CIN, n_per_core):
    L = (W + 2) * CIN
    WC = W * COUT
    BH = B * H

    def kernel(x_ref, wband_ref, bc_ref, wf1_ref, bf1_ref, wf2_ref,
               out_ref, acc_ref):
        c = pl.program_id(0)
        i = pl.program_id(1)

        @pl.when(i == 0)
        def _init():
            acc_ref[...] = jnp.zeros_like(acc_ref)

        # --- conv1 (3x3, s=1, p=1) as 3 banded MXU matmuls on the bf16 block
        xb = x_ref[...].astype(jnp.float32)                    # (B, H+2, L)

        def tap(dy):
            xs = xb[:, dy:dy + H, :].reshape(BH, L).astype(jnp.bfloat16)
            return jnp.dot(xs, wband_ref[dy],
                           preferred_element_type=jnp.float32)  # (B*H, W*COUT)

        conv = tap(0) + tap(1) + tap(2)
        conv_relu = jnp.maximum(conv + bc_ref[...], 0.0)        # f32

        # --- fc1 (64*H*W -> 1) on the MXU (trace trick), kept in f32
        y1 = jnp.dot(conv_relu, wf1_ref[...],
                     preferred_element_type=jnp.float32)        # (B*H, H)
        y1_3d = y1.reshape(B, H, H)
        eye = (lax.broadcasted_iota(jnp.int32, (H, H), 0) ==
               lax.broadcasted_iota(jnp.int32, (H, H), 1))
        diag = jnp.where(eye[None, :, :], y1_3d, 0.0)
        s = jnp.sum(diag, axis=2, keepdims=True)                # (B, H, 1)
        fc1 = jnp.sum(s, axis=1, keepdims=True).reshape(B, 1)   # (B, 1)
        fc1_relu = jnp.maximum(fc1 + bf1_ref[0], 0.0)

        # --- fc2 partial for this block (wf2 rows are zero for padded samples)
        blk = c * n_per_core + i
        w2v = wf2_ref[blk]                                      # (B, 1)
        acc_ref[...] = acc_ref[...] + jnp.sum(fc1_relu * w2v)

        @pl.when(i == n_per_core - 1)
        def _finalize():
            out_ref[...] = acc_ref[...].reshape(1, 1, 128)

    return kernel


def box_score_forward(features_nchw, kparams, *, block_batch=None):
    """features_nchw: (N, C, H, W) float32.  Returns shape (1,) float32."""
    wband, bc_wc, wf1m, bf1, wf2_full, bf2 = kparams
    N, CIN, H, W = features_nchw.shape
    Hp2 = H + 2
    L = (W + 2) * CIN
    WC = W * COUT
    assert N <= 1280
    # TODO(synk): N > 1280 (PyTorch negative F.pad == truncation) not implemented.

    # --- generation-dependent blocking: v7x has 64 MiB VMEM and 2 TCs
    kind = _device_kind()
    num_cores = 2 if any(t in kind for t in ("v7", "v4", "v5p")) else 1
    if block_batch is None:
        block_batch = 32 if "v7" in kind else 64
    vmem_limit = None if "v7" in kind else 96 * 1024 * 1024

    B = max(1, min(block_batch, _cdiv(N, num_cores)))
    n_per_core = _cdiv(_cdiv(N, num_cores), B)
    n_blocks = num_cores * n_per_core
    N_pad = n_blocks * B

    # NCHW -> (N_pad, H+2, (W+2)*CIN), spatially zero-padded, streamed as bf16.
    x_nhwc = jnp.transpose(features_nchw.astype(jnp.float32), (0, 2, 3, 1))
    xp = jnp.pad(x_nhwc, ((0, N_pad - N), (1, 1), (1, 1), (0, 0)))
    xp = xp.reshape(N_pad, Hp2, L).astype(jnp.bfloat16)

    # fc2 weights per block; zero beyond N so zero-padded samples (which have
    # fc1_relu = relu(bf1) != 0) contribute nothing.  Kept in lockstep with
    # the (n_blocks, B) block ordering above.
    wf2_blocks = jnp.zeros((N_pad,), jnp.float32).at[:N].set(wf2_full[:N])
    wf2_blocks = wf2_blocks.reshape(n_blocks, B, 1)

    kernel = _make_kernel(B, H, W, CIN, n_per_core)

    out = pl.pallas_call(
        kernel,
        out_shape=jax.ShapeDtypeStruct((num_cores, 1, 128), jnp.float32),
        grid=(num_cores, n_per_core),
        in_specs=[
            # padded bf16 activations, one block of B samples per step
            pl.BlockSpec((B, Hp2, L), lambda c, i: (c * n_per_core + i, 0, 0)),
            # resident banded conv weights (bf16), bias, fc1 weights (f32)
            pl.BlockSpec((3, L, WC), lambda c, i: (0, 0, 0)),
            pl.BlockSpec((1, WC), lambda c, i: (0, 0)),
            pl.BlockSpec((WC, H), lambda c, i: (0, 0)),
            # fc1 bias scalar in SMEM
            pl.BlockSpec(memory_space=pltpu.MemorySpace.SMEM),
            # full fc2 weights resident in VMEM, sliced per block in-kernel
            pl.BlockSpec((n_blocks, B, 1), lambda c, i: (0, 0, 0)),
        ],
        # per-core partial sums, written once per core as a 128-lane store
        out_specs=pl.BlockSpec((1, 1, 128), lambda c, i: (c, 0, 0)),
        scratch_shapes=[pltpu.VMEM((1, 128), jnp.float32)],
        compiler_params=pltpu.CompilerParams(
            dimension_semantics=("parallel", "arbitrary"),
            vmem_limit_bytes=vmem_limit),
    )(xp, wband, bc_wc, wf1m, bf1, wf2_blocks)

    # fold the per-core partials and the fc2 bias in the wrapper
    return (jnp.sum(out[:, 0, 0]) + bf2).reshape(1)


def init_params(key, cin, h, w):
    """Deterministic synthetic parameters with PyTorch-layout shapes."""
    cout = COUT
    k1, k2, k3, k4, k5, k6 = jax.random.split(key, 6)
    conv_w = 0.05 * jax.random.normal(k1, (cout, cin, 3, 3), jnp.float32)
    conv_b = 0.05 * jax.random.normal(k2, (cout,), jnp.float32)
    fc1_w = 0.01 * jax.random.normal(k3, (1, cout * h * w), jnp.float32)
    fc1_b = 0.10 * jax.random.normal(k4, (1,), jnp.float32)
    fc2_w = 0.10 * jax.random.normal(k5, (1, 1280), jnp.float32)
    fc2_b = 0.10 * jax.random.normal(k6, (1,), jnp.float32)
    return conv_w, conv_b, fc1_w, fc1_b, fc2_w, fc2_b


def to_kernel_params(torch_params, cin, h, w):
    """Re-order PyTorch-layout params for the banded-matmul kernel (exact)."""
    conv_w, conv_b, fc1_w, fc1_b, fc2_w, fc2_b = torch_params
    cout = conv_w.shape[0]
    L = (w + 2) * cin
    WC = w * cout
    # Banded conv matrices: one (L, W*COUT) matrix per kernel row dy.
    #   wband[dy, w_in*CIN + c, w_out*COUT + co] = conv_w[co, c, dy, w_in - w_out]
    wband = jnp.zeros((3, L, WC), jnp.float32)
    for dy in range(3):
        for kx in range(3):
            blk = conv_w[:, :, dy, kx].T                       # (CIN, COUT)
            for wo in range(w):
                wi = wo + kx
                wband = wband.at[dy, wi * cin:(wi + 1) * cin,
                                 wo * cout:(wo + 1) * cout].set(blk)
    wband = wband.astype(jnp.bfloat16)
    # conv bias replicated over w: index w*COUT + co -> conv_b[co]
    bc_wc = jnp.tile(conv_b, (w,)).reshape(1, WC)
    # fc1 weights as (W*COUT, H): column h holds the weights multiplying the
    # conv output row h (PyTorch flatten order c*H*W + h*W + w).
    f = fc1_w.reshape(cout, h, w)
    wf1m = jnp.transpose(f, (2, 0, 1)).reshape(WC, h)
    wf2 = fc2_w.reshape(1280)
    return wband, bc_wc, wf1m, fc1_b, wf2, fc2_b


def reference_forward(x_nchw, torch_params):
    """Pure-JAX replica of the PyTorch forward (correctness check)."""
    conv_w, conv_b, fc1_w, fc1_b, fc2_w, fc2_b = torch_params
    y = lax.conv_general_dilated(
        x_nchw, conv_w, window_strides=(1, 1), padding=((1, 1), (1, 1)),
        dimension_numbers=("NCHW", "OIHW", "NCHW"),
        precision=lax.Precision.HIGHEST)
    y = jnp.maximum(y + conv_b[None, :, None, None], 0.0)
    y = y.reshape(y.shape[0], -1)
    y = jnp.maximum(y @ fc1_w.T + fc1_b, 0.0).reshape(-1)
    y = jnp.pad(y, (0, 1280 - y.shape[0]))
    return fc2_w @ y + fc2_b


if __name__ == "__main__":
    N, C, H, W = 2, 4, 16, 16
    key = jax.random.PRNGKey(0)
    kx, kp = jax.random.split(key)
    features = jax.random.normal(kx, (N, C, H, W), jnp.float32)

    torch_params = init_params(kp, C, H, W)
    kparams = to_kernel_params(torch_params, C, H, W)

    out = box_score_forward(features, kparams)
    out = jax.block_until_ready(out)

    ref = reference_forward(features, torch_params)
    assert out.shape == (1,)
    assert jnp.allclose(out, ref, rtol=2e-2, atol=2e-2), (out, ref)

    print("KERNEL_OK")
</pallas_src>

<mosaic_0001>
module attributes {stable_mosaic.version = 11 : i64} {
  func.func @kernel(%arg0: i32, %arg1: i32, %arg2: memref<2x18x72xbf16, #tpu.memory_space<vmem>>, %arg3: memref<3x72x1024xbf16, #tpu.memory_space<vmem>>, %arg4: memref<1x1024xf32, #tpu.memory_space<vmem>>, %arg5: memref<1024x16xf32, #tpu.memory_space<vmem>>, %arg6: memref<1xf32, #tpu.memory_space<smem>>, %arg7: memref<1x2x1xf32, #tpu.memory_space<vmem>>, %arg8: memref<1x1x128xf32, #tpu.memory_space<vmem>>, %arg9: memref<1x128xf32, #tpu.memory_space<vmem>>) attributes {dimension_semantics = [#tpu.dimension_semantics<parallel>, #tpu.dimension_semantics<arbitrary>], iteration_bounds = array<i64: 1, 1>, scalar_prefetch = 0 : i64, scratch_operands = 1 : i64, tpu.core_type = #tpu.core_type<tc>, window_params = [{transform_indices = @transform_0, window_bounds = array<i64: 2, 18, 72>}, {pipeline_mode = #tpu.pipeline_mode<synchronous>, transform_indices = @transform_1, window_bounds = array<i64: 3, 72, 1024>}, {pipeline_mode = #tpu.pipeline_mode<synchronous>, transform_indices = @transform_2, window_bounds = array<i64: 1, 1024>}, {pipeline_mode = #tpu.pipeline_mode<synchronous>, transform_indices = @transform_3, window_bounds = array<i64: 1024, 16>}, {transform_indices = @transform_4, window_bounds = array<i64: 1>}, {pipeline_mode = #tpu.pipeline_mode<synchronous>, transform_indices = @transform_5, window_bounds = array<i64: 1, 2, 1>}, {transform_indices = @transform_6, window_bounds = array<i64: 1, 1, 128>}]} {
    %c0_i32 = arith.constant 0 : i32
    %0 = arith.cmpi eq, %arg1, %c0_i32 : i32
    %1 = arith.extui %0 : i1 to i32
    %c0_i32_0 = arith.constant 0 : i32
    %2 = arith.cmpi ne, %1, %c0_i32_0 : i32
    scf.if %2 {
      %cst_32 = arith.constant 0.000000e+00 : f32
      %68 = vector.broadcast %cst_32 : f32 to vector<1x128xf32>
      %c0_33 = arith.constant 0 : index
      %c0_34 = arith.constant 0 : index
      %69 = vector.load %arg9[%c0_33, %c0_34] : memref<1x128xf32, #tpu.memory_space<vmem>>, vector<1x128xf32>
      tpu.vector_store %arg9[%c0_33, %c0_34], %68 {strides = array<i32>} : memref<1x128xf32, #tpu.memory_space<vmem>>, vector<1x128xf32>,
    } else {
    }
    %c0 = arith.constant 0 : index
    %c0_1 = arith.constant 0 : index
    %c0_2 = arith.constant 0 : index
    %3 = vector.load %arg2[%c0, %c0_1, %c0_2] : memref<2x18x72xbf16, #tpu.memory_space<vmem>>, vector<2x18x72xbf16>
    %4 = arith.extf %3 : vector<2x18x72xbf16> to vector<2x18x72xf32>
    %5 = vector.extract_strided_slice %4 {offsets = [0, 0, 0], sizes = [2, 16, 72], strides = [1, 1, 1]} : vector<2x18x72xf32> to vector<2x16x72xf32>
    %6 = vector.shape_cast %5 : vector<2x16x72xf32> to vector<32x72xf32>
    %7 = arith.truncf %6 : vector<32x72xf32> to vector<32x72xbf16>
    %c0_3 = arith.constant 0 : index
    %c0_4 = arith.constant 0 : index
    %c0_5 = arith.constant 0 : index
    %8 = vector.load %arg3[%c0_3, %c0_4, %c0_5] : memref<3x72x1024xbf16, #tpu.memory_space<vmem>>, vector<1x72x1024xbf16>
    %9 = vector.shape_cast %8 : vector<1x72x1024xbf16> to vector<72x1024xbf16>
    %cst = arith.constant dense<0.000000e+00> : vector<32x1024xf32>
    %10 = tpu.matmul %7, %9, %cst {dimension_numbers = #tpu.dot_dimension_numbers<[1], [0], [0], [1], [0, 0, 1, 1], [], []>} : vector<32x72xbf16>, vector<72x1024xbf16>, vector<32x1024xf32> -> vector<32x1024xf32>
    %11 = vector.extract_strided_slice %4 {offsets = [0, 1, 0], sizes = [2, 16, 72], strides = [1, 1, 1]} : vector<2x18x72xf32> to vector<2x16x72xf32>
    %12 = vector.shape_cast %11 : vector<2x16x72xf32> to vector<32x72xf32>
    %13 = arith.truncf %12 : vector<32x72xf32> to vector<32x72xbf16>
    %c1 = arith.constant 1 : index
    %c0_6 = arith.constant 0 : index
    %c0_7 = arith.constant 0 : index
    %14 = vector.load %arg3[%c1, %c0_6, %c0_7] : memref<3x72x1024xbf16, #tpu.memory_space<vmem>>, vector<1x72x1024xbf16>
    %15 = vector.shape_cast %14 : vector<1x72x1024xbf16> to vector<72x1024xbf16>
    %cst_8 = arith.constant dense<0.000000e+00> : vector<32x1024xf32>
    %16 = tpu.matmul %13, %15, %cst_8 {dimension_numbers = #tpu.dot_dimension_numbers<[1], [0], [0], [1], [0, 0, 1, 1], [], []>} : vector<32x72xbf16>, vector<72x1024xbf16>, vector<32x1024xf32> -> vector<32x1024xf32>
    %17 = arith.addf %10, %16 : vector<32x1024xf32>
    %18 = vector.extract_strided_slice %4 {offsets = [0, 2, 0], sizes = [2, 16, 72], strides = [1, 1, 1]} : vector<2x18x72xf32> to vector<2x16x72xf32>
    %19 = vector.shape_cast %18 : vector<2x16x72xf32> to vector<32x72xf32>
    %20 = arith.truncf %19 : vector<32x72xf32> to vector<32x72xbf16>
    %c2 = arith.constant 2 : index
    %c0_9 = arith.constant 0 : index
    %c0_10 = arith.constant 0 : index
    %21 = vector.load %arg3[%c2, %c0_9, %c0_10] : memref<3x72x1024xbf16, #tpu.memory_space<vmem>>, vector<1x72x1024xbf16>
    %22 = vector.shape_cast %21 : vector<1x72x1024xbf16> to vector<72x1024xbf16>
    %cst_11 = arith.constant dense<0.000000e+00> : vector<32x1024xf32>
    %23 = tpu.matmul %20, %22, %cst_11 {dimension_numbers = #tpu.dot_dimension_numbers<[1], [0], [0], [1], [0, 0, 1, 1], [], []>} : vector<32x72xbf16>, vector<72x1024xbf16>, vector<32x1024xf32> -> vector<32x1024xf32>
    %24 = arith.addf %17, %23 : vector<32x1024xf32>
    %c0_12 = arith.constant 0 : index
    %c0_13 = arith.constant 0 : index
    %25 = vector.load %arg4[%c0_12, %c0_13] : memref<1x1024xf32, #tpu.memory_space<vmem>>, vector<1x1024xf32>
    %26 = vector.broadcast %25 : vector<1x1024xf32> to vector<32x1024xf32>
    %27 = arith.addf %24, %26 : vector<32x1024xf32>
    %cst_14 = arith.constant 0.000000e+00 : f32
    %28 = vector.broadcast %cst_14 : f32 to vector<32x1024xf32>
    %29 = arith.maximumf %27, %28 : vector<32x1024xf32>
    %c0_15 = arith.constant 0 : index
    %c0_16 = arith.constant 0 : index
    %30 = vector.load %arg5[%c0_15, %c0_16] : memref<1024x16xf32, #tpu.memory_space<vmem>>, vector<1024x16xf32>
    %cst_17 = arith.constant dense<0.000000e+00> : vector<32x16xf32>
    %31 = tpu.matmul %29, %30, %cst_17 {dimension_numbers = #tpu.dot_dimension_numbers<[1], [0], [0], [1], [0, 0, 1, 1], [], []>} : vector<32x1024xf32>, vector<1024x16xf32>, vector<32x16xf32> -> vector<32x16xf32>
    %32 = vector.shape_cast %31 : vector<32x16xf32> to vector<2x16x16xf32>
    %33 = tpu.iota {dimensions = array<i32: 0>} : vector<16x16xi32>
    %34 = tpu.iota {dimensions = array<i32: 1>} : vector<16x16xi32>
    %35 = arith.cmpi eq, %33, %34 : vector<16x16xi32>
    %36 = vector.shape_cast %35 : vector<16x16xi1> to vector<1x16x16xi1>
    %cst_18 = arith.constant 0.000000e+00 : f32
    %37 = vector.shape_cast %36 : vector<1x16x16xi1> to vector<1x16x16xi1>
    %38 = vector.broadcast %37 : vector<1x16x16xi1> to vector<2x16x16xi1>
    %39 = vector.broadcast %cst_18 : f32 to vector<2x16x16xf32>
    %40 = arith.select %38, %32, %39 : vector<2x16x16xi1>, vector<2x16x16xf32>
    %cst_19 = arith.constant dense<0.000000e+00> : vector<2x16xf32>
    %41 = vector.multi_reduction <add>, %40, %cst_19 [2] : vector<2x16x16xf32> to vector<2x16xf32>
    %42 = vector.shape_cast %41 : vector<2x16xf32> to vector<2x16x1xf32>
    %cst_20 = arith.constant dense<0.000000e+00> : vector<2x1xf32>
    %43 = vector.multi_reduction <add>, %42, %cst_20 [1] : vector<2x16x1xf32> to vector<2x1xf32>
    %44 = vector.shape_cast %43 : vector<2x1xf32> to vector<2x1x1xf32>
    %45 = vector.shape_cast %44 : vector<2x1x1xf32> to vector<2x1xf32>
    %c0_21 = arith.constant 0 : index
    %46 = memref.load %arg6[%c0_21] : memref<1xf32, #tpu.memory_space<smem>>
    %47 = vector.broadcast %46 : f32 to vector<2x1xf32>
    %48 = arith.addf %45, %47 : vector<2x1xf32>
    %cst_22 = arith.constant 0.000000e+00 : f32
    %49 = vector.broadcast %cst_22 : f32 to vector<2x1xf32>
    %50 = arith.maximumf %48, %49 : vector<2x1xf32>
    %c1_i32 = arith.constant 1 : i32
    %51 = arith.muli %arg0, %c1_i32 : i32
    %52 = arith.addi %51, %arg1 : i32
    %53 = arith.index_cast %52 : i32 to index
    %c0_23 = arith.constant 0 : index
    %c0_24 = arith.constant 0 : index
    %54 = vector.load %arg7[%53, %c0_23, %c0_24] : memref<1x2x1xf32, #tpu.memory_space<vmem>>, vector<1x2x1xf32>
    %55 = vector.shape_cast %54 : vector<1x2x1xf32> to vector<2x1xf32>
    %c0_25 = arith.constant 0 : index
    %c0_26 = arith.constant 0 : index
    %56 = vector.load %arg9[%c0_25, %c0_26] : memref<1x128xf32, #tpu.memory_space<vmem>>, vector<1x128xf32>
    %57 = arith.mulf %50, %55 : vector<2x1xf32>
    %58 = vector.shape_cast %57 : vector<2x1xf32> to vector<1x2x1xf32>
    %cst_27 = arith.constant dense<0.000000e+00> : vector<1xf32>
    %59 = vector.multi_reduction <add>, %58, %cst_27 [1, 2] : vector<1x2x1xf32> to vector<1xf32>
    %60 = vector.shape_cast %59 : vector<1xf32> to vector<1x1x1xf32>
    %61 = vector.extract %60[0, 0, 0] : f32 from vector<1x1x1xf32>
    %62 = vector.broadcast %61 : f32 to vector<1x128xf32>
    %63 = arith.addf %56, %62 : vector<1x128xf32>
    %c0_28 = arith.constant 0 : index
    %c0_29 = arith.constant 0 : index
    %64 = vector.load %arg9[%c0_28, %c0_29] : memref<1x128xf32, #tpu.memory_space<vmem>>, vector<1x128xf32>
    tpu.vector_store %arg9[%c0_28, %c0_29], %63 {strides = array<i32>} : memref<1x128xf32, #tpu.memory_space<vmem>>, vector<1x128xf32>,
    %c0_i32_30 = arith.constant 0 : i32
    %65 = arith.cmpi eq, %arg1, %c0_i32_30 : i32
    %66 = arith.extui %65 : i1 to i32
    %c0_i32_31 = arith.constant 0 : i32
    %67 = arith.cmpi ne, %66, %c0_i32_31 : i32
    scf.if %67 {
      %c0_32 = arith.constant 0 : index
      %c0_33 = arith.constant 0 : index
      %68 = vector.load %arg9[%c0_32, %c0_33] : memref<1x128xf32, #tpu.memory_space<vmem>>, vector<1x128xf32>
      %69 = vector.shape_cast %68 : vector<1x128xf32> to vector<1x1x128xf32>
      %c0_34 = arith.constant 0 : index
      %c0_35 = arith.constant 0 : index
      %c0_36 = arith.constant 0 : index
      %70 = vector.load %arg8[%c0_34, %c0_35, %c0_36] : memref<1x1x128xf32, #tpu.memory_space<vmem>>, vector<1x1x128xf32>
      tpu.vector_store %arg8[%c0_34, %c0_35, %c0_36], %69 {strides = array<i32>} : memref<1x1x128xf32, #tpu.memory_space<vmem>>, vector<1x1x128xf32>,
    } else {
    }
    return
  }
  func.func @transform_0(%arg0: i32, %arg1: i32) -> (i32, i32, i32) {
    %c1_i32 = arith.constant 1 : i32
    %0 = arith.muli %arg0, %c1_i32 : i32
    %1 = arith.addi %0, %arg1 : i32
    %c0_i32 = arith.constant 0 : i32
    %c0_i32_0 = arith.constant 0 : i32
    %c0_i32_1 = arith.constant 0 : i32
    return %1, %c0_i32, %c0_i32_0 : i32, i32, i32
  }
  func.func @transform_1(%arg0: i32, %arg1: i32) -> (i32, i32, i32) {
    %c0_i32 = arith.constant 0 : i32
    %c0_i32_0 = arith.constant 0 : i32
    %c0_i32_1 = arith.constant 0 : i32
    %c0_i32_2 = arith.constant 0 : i32
    return %c0_i32, %c0_i32_0, %c0_i32_1 : i32, i32, i32
  }
  func.func @transform_2(%arg0: i32, %arg1: i32) -> (i32, i32) {
    %c0_i32 = arith.constant 0 : i32
    %c0_i32_0 = arith.constant 0 : i32
    %c0_i32_1 = arith.constant 0 : i32
    return %c0_i32, %c0_i32_0 : i32, i32
  }
  func.func @transform_3(%arg0: i32, %arg1: i32) -> (i32, i32) {
    %c0_i32 = arith.constant 0 : i32
    %c0_i32_0 = arith.constant 0 : i32
    %c0_i32_1 = arith.constant 0 : i32
    return %c0_i32, %c0_i32_0 : i32, i32
  }
  func.func @transform_4(%arg0: i32, %arg1: i32) -> i32 {
    %c0_i32 = arith.constant 0 : i32
    %c0_i32_0 = arith.constant 0 : i32
    return %c0_i32 : i32
  }
  func.func @transform_5(%arg0: i32, %arg1: i32) -> (i32, i32, i32) {
    %c0_i32 = arith.constant 0 : i32
    %c0_i32_0 = arith.constant 0 : i32
    %c0_i32_1 = arith.constant 0 : i32
    %c0_i32_2 = arith.constant 0 : i32
    return %c0_i32, %c0_i32_0, %c0_i32_1 : i32, i32, i32
  }
  func.func @transform_6(%arg0: i32, %arg1: i32) -> (i32, i32, i32) {
    %c0_i32 = arith.constant 0 : i32
    %c0_i32_0 = arith.constant 0 : i32
    %c0_i32_1 = arith.constant 0 : i32
    return %arg0, %c0_i32, %c0_i32_0 : i32, i32, i32
  }
}

</mosaic_0001>

<bundles_post_ra>
// kernel: tpu_custom_call.1
= control target key start
LH: loop header
LB: loop body
LE: loop exit
PB: predicated region body
PF: predicated region fallthrough
CT: control target
= control target key end

     0   :  { %12 = vsyncpa [#allocation5], 0  ;;  %s3316_s0 = inlined_call_operand.hbm [shape: bf16[2,18,72], index: 0, kind: input, shape index: {}]   ;;  %s3317_s1 = inlined_call_operand.hbm [shape: bf16[3,72,1024], index: 1, kind: input, shape index: {}]   ;;  %s3318_s2 = inlined_call_operand.hbm [shape: f32[1,1024], index: 2, kind: input, shape index: {}]   ;;  %s3319_s3 = inlined_call_operand.hbm [shape: f32[1024,16], index: 3, kind: input, shape index: {}]   ;;  %s3320_s4 = inlined_call_operand.<no memory space> [shape: f32[1], index: 4, kind: input, shape index: {}]   ;;  %s3321_s5 = inlined_call_operand.hbm [shape: f32[1,2,1], index: 5, kind: input, shape index: {}]   ;;  %s3322_s6 = inlined_call_operand.hbm [shape: f32[1,1,128], index: 6, kind: output, shape index: {}]  }
   0x1   :  { %13 = vsyncpa [#allocation8], 0 }
   0x2   :  { %14 = vsyncpa [#allocation11], 0 }
   0x3   :  { %15 = vsyncpa [#allocation6], 0  ;;  %s2951_s21 = smov [#allocation7]   ;;  %s2811_s25 = scalar_lea.hbm %s3317_s1, 13824 }
   0x4   :  { %s38_s22 = sshll.u32 %s2951_s21, 4  ;;  %p2812_p0 = scmp.ne.s32.totalorder %s3317_s1, %s2811_s25  ;;  %s39_s22 = int_to_ptr.vmem [resolvable:$true] %s38_s22 }
   0x5   :  { %p2815_p1 = scmp.lt.u32.totalorder %s2811_s25, %s3317_s1 }
   0x7   :  { %p2817_p2 = pnand %p2815_p1, %p2812_p0 }
   0x9   :  { %2820 = shalt.err (!%p2817_p2)
}
   0xa   :  { %s2821_s30 = scalar_lea.vmem %s39_s22, 13824  ;;  %p2826_p4 = scmp.lt.s32.totalorder %s39_s22, %s39_s22 }
   0xb   :  { %p2822_p3 = scmp.ne.s32.totalorder %s39_s22, %s2821_s30  ;;  %p2827_p5 = scmp.lt.s32.totalorder %s2821_s30, %s2821_s30 }
   0xd   :  { %p2828_p6 = por %p2827_p5, %p2826_p4 }
   0xf   :  { %p2829_p7 = pnand %p2828_p6, %p2822_p3 }
  0x11   :  { %2832 = shalt.err (!%p2829_p7)
}
  0x12   :  { %s2952_s7 = smov 512   ;;  %s2953_s8 = smov 32  }
  0x13   :  { %44 = dma.hbm_to_vmem [thread:$0]  %s3317_s1, 13824, %s39_s22, [#allocation8], %s2952_s7, %s2952_s7, %s2953_s8  }
  0x14   :  { %s2954_s11 = smov [#allocation10]   ;;  %s2833_s15 = scalar_lea.hbm %s3319_s3, 16384 }
  0x15   :  { %s60_s12 = sshll.u32 %s2954_s11, 4  ;;  %p2834_p8 = scmp.ne.s32.totalorder %s3319_s3, %s2833_s15  ;;  %s61_s12 = int_to_ptr.vmem [resolvable:$true] %s60_s12 }
  0x16   :  { %p2837_p9 = scmp.lt.u32.totalorder %s2833_s15, %s3319_s3 }
  0x18   :  { %p2839_p10 = pnand %p2837_p9, %p2834_p8 }
  0x1a   :  { %2842 = shalt.err (!%p2839_p10)
}
  0x1b   :  { %s2843_s20 = scalar_lea.vmem %s61_s12, 16384  ;;  %p2848_p12 = scmp.lt.s32.totalorder %s61_s12, %s61_s12 }
  0x1c   :  { %p2844_p11 = scmp.ne.s32.totalorder %s61_s12, %s2843_s20  ;;  %p2849_p13 = scmp.lt.s32.totalorder %s2843_s20, %s2843_s20 }
  0x1e   :  { %p2850_p0 = por %p2849_p13, %p2848_p12 }
  0x20   :  { %p2851_p1 = pnand %p2850_p0, %p2844_p11 }
  0x22   :  { %2854 = shalt.err (!%p2851_p1)
}
  0x23   :  { %s2955_s1 = smov 128   ;;  %s2956_s21 = smov 8  }
  0x24   :  { %66 = dma.hbm_to_vmem [thread:$0]  %s3319_s3, 16384, %s61_s12, [#allocation11], %s2955_s1, %s2955_s1, %s2956_s21  }
  0x25   :  { %s2957_s24 = smov [#allocation4]   ;;  %s2855_s28 = scalar_lea.hbm %s3316_s0, 384 }
  0x26   :  { %s26_s25 = sshll.u32 %s2957_s24, 4  ;;  %p2856_p2 = scmp.ne.s32.totalorder %s3316_s0, %s2855_s28  ;;  %s27_s25 = int_to_ptr.vmem [resolvable:$true] %s26_s25 }
  0x27   :  { %p2859_p3 = scmp.lt.u32.totalorder %s2855_s28, %s3316_s0 }
  0x29   :  { %p2861_p4 = pnand %p2859_p3, %p2856_p2 }
  0x2b   :  { %2864 = shalt.err (!%p2861_p4)
}
  0x2c   :  { %s2865_s9 = scalar_lea.vmem %s27_s25, 384  ;;  %p2870_p6 = scmp.lt.s32.totalorder %s27_s25, %s27_s25 }
  0x2d   :  { %p2866_p5 = scmp.ne.s32.totalorder %s27_s25, %s2865_s9  ;;  %p2871_p7 = scmp.lt.s32.totalorder %s2865_s9, %s2865_s9 }
  0x2f   :  { %p2872_p8 = por %p2871_p7, %p2870_p6 }
  0x31   :  { %p2873_p9 = pnand %p2872_p8, %p2866_p5 }
  0x33   :  { %2876 = shalt.err (!%p2873_p9)
}
  0x34   :  { %s2958_s3 = smov 64   ;;  %s2959_s10 = smov 4  }
  0x35   :  { %32 = dma.hbm_to_vmem [thread:$0]  %s3316_s0, 384, %s27_s25, [#allocation5], %s2958_s3, %s2958_s3, %s2959_s10  }
  0x36   :  { %s2960_s13 = smov [#allocation9]   ;;  %s2961_s15 = smov [#allocation12]  }
  0x37   :  { %s51_s14 = sshll.u32 %s2960_s13, 4  ;;  %s75_s16 = sshll.u32 %s2961_s15, 4  ;;  %s52_s14 = int_to_ptr.vmem [resolvable:$true] %s51_s14  ;;  %s76_s16 = int_to_ptr.vmem [resolvable:$true] %s75_s16 }
  0x38   :  { %s2877_s19 = scalar_lea.hbm %s3318_s2, 128 }
  0x39   :  { %p2878_p10 = scmp.ne.s32.totalorder %s3318_s2, %s2877_s19  ;;  %p2881_p11 = scmp.lt.u32.totalorder %s2877_s19, %s3318_s2 }
  0x3b   :  { %p2883_p12 = pnand %p2881_p11, %p2878_p10 }
  0x3d   :  { %2886 = shalt.err (!%p2883_p12)
}
  0x3e   :  { %s2887_s0 = scalar_lea.vmem %s52_s14, 128  ;;  %p2892_p0 = scmp.lt.s32.totalorder %s52_s14, %s52_s14 }
  0x3f   :  { %p2888_p13 = scmp.ne.s32.totalorder %s52_s14, %s2887_s0  ;;  %p2893_p1 = scmp.lt.s32.totalorder %s2887_s0, %s2887_s0 }
  0x41   :  { %p2894_p2 = por %p2893_p1, %p2892_p0 }
  0x43   :  { %p2895_p3 = pnand %p2894_p2, %p2888_p13 }
  0x45   :  { %2898 = shalt.err (!%p2895_p3)
}
  0x46   :  { %54 = dma.hbm_to_vmem [thread:$0]  %s3318_s2, 128, %s52_s14, [#allocation8]  }
  0x47   :  { %s2899_s27 = scalar_lea.hbm %s3321_s5, 32 }
  0x48   :  { %p2900_p4 = scmp.ne.s32.totalorder %s3321_s5, %s2899_s27  ;;  %p2903_p5 = scmp.lt.u32.totalorder %s2899_s27, %s3321_s5 }
  0x4a   :  { %p2905_p6 = pnand %p2903_p5, %p2900_p4 }
  0x4c   :  { %2908 = shalt.err (!%p2905_p6)
}
  0x4d   :  { %s2909_s8 = scalar_lea.vmem %s76_s16, 32  ;;  %p2914_p8 = scmp.lt.s32.totalorder %s76_s16, %s76_s16 }
  0x4e   :  { %p2910_p7 = scmp.ne.s32.totalorder %s76_s16, %s2909_s8  ;;  %p2915_p9 = scmp.lt.s32.totalorder %s2909_s8, %s2909_s8 }
  0x50   :  { %p2916_p10 = por %p2915_p9, %p2914_p8 }
  0x52   :  { %p2917_p11 = pnand %p2916_p10, %p2910_p7 }
  0x54   :  { %2920 = shalt.err (!%p2917_p11)
}
  0x55   :  { %78 = dma.hbm_to_vmem [thread:$0]  %s3321_s5, 32, %s76_s16, [#allocation11]  }
  0x56   :  { %2943 = dma.done.wait [#allocation5], 384  }
  0x57   :  { %2944 = vsyncadd [#allocation5], 4294966912 }
  0x58   :  { %2945 = dma.done.wait [#allocation8], 13952  }
  0x59   :  { %2946 = vsyncadd [#allocation8], 4294953344 }
  0x5a   :  { %2947 = dma.done.wait [#allocation11], 16416  }
  0x5b   :  { %2948 = vsyncadd [#allocation11], 4294950880  ;;  %v2962_v0 = vmov 0   ;;  %v176_v1 = vld [vmem:[#allocation7 + $0x120] sm:$0xff]  ;;  %v177_v3 = vld [vmem:[#allocation7 + $0x128] sm:$0xff]  ;;  %vm158_vm0 = vcmask 1046528  }
  0x5c   :  { %456 = vmatprep.mubr.bf16.mxu0 %v2962_v0  ;;  %509 = vmatprep.mubr.bf16.mxu1 %v2962_v0  ;;  %v180_v2 = vld [vmem:[#allocation7 + $0x140] sm:$0xff]  ;;  %v181_v5 = vld [vmem:[#allocation7 + $0x148] sm:$0xff]  ;;  %v3064_v28 = vld [vmem:[#allocation4 + $0x8] sm:$0x1]  ;;  %vm399_vm1 = vcmask 1043456   ;;  %vm392_vm2 = vcmask 588800  }
  0x5d   :  { %v2244_v4 = vcombine.high %v176_v1, %v180_v2  ;;  %v2243_v6 = vcombine.low %v176_v1, %v180_v2  ;;  %v184_v7 = vld [vmem:[#allocation7 + $0x160] sm:$0xff]  ;;  %v2246_v9 = vcombine.high %v177_v3, %v181_v5  ;;  %v2245_v10 = vcombine.low %v177_v3, %v181_v5  ;;  %v185_v12 = vld [vmem:[#allocation7 + $0x168] sm:$0xff]  ;;  %v3075_v45 = vld [vmem:[#allocation4 + $0xc] sm:$0xff]   ;;  %s2964_s10 = smov [#allocation13]  }
  0x5e   :  { %v188_v8 = vld [vmem:[#allocation7 + $0x180] sm:$0xff]  ;;  %v189_v13 = vld [vmem:[#allocation7 + $0x188] sm:$0xff]  ;;  %v110_v34 = vunpack.c.l.bf16 %v3064_v28  ;;  %v3077_v46 = vld [vmem:[#allocation4 + $0x14] sm:$0x1]  ;;  %v111_v55 = vunpack.c.l.bf16 %v3075_v45  ;;  %v112_v56 = vunpack.c.h.bf16 %v3075_v45  ;;  %vm1058_vm3 = vcmask 1045504   ;;  %s2230_s11 = sshll.u32 %s2964_s10, 4  ;;  %s2231_s11 = int_to_ptr.vmem [resolvable:$true] %s2230_s11 }
  0x5f   :  { %v2252_v11 = vcombine.high %v184_v7, %v188_v8  ;;  %v192_v14 = vld [vmem:[#allocation7 + $0x1a0] sm:$0xff]  ;;  %424 = vmatprep.subr.bf16.mxu0 %v2244_v4  ;;  %v2254_v15 = vcombine.high %v185_v12, %v189_v13  ;;  %v193_v17 = vld [vmem:[#allocation7 + $0x1a8] sm:$0xff]  ;;  %477 = vmatprep.subr.bf16.mxu1 %v2246_v9  ;;  %v2251_v19 = vcombine.low %v184_v7, %v188_v8  ;;  %v178_v49 = vld [vmem:[#allocation7 + $0x130] sm:$0xff]  ;;  %v113_v57 = vunpack.c.l.bf16 %v3077_v46  ;;  %s2921_s12 = scalar_lea.vmem %s2231_s11, 16  ;;  %s2925_s13 = scalar_lea.vmem %s2231_s11, 32 }
  0x60   :  { %v196_v16 = vld [vmem:[#allocation7 + $0x1c0] sm:$0xff]  ;;  %v197_v18 = vld [vmem:[#allocation7 + $0x1c8] sm:$0xff]  ;;  %425 = vmatpush1.bf16.msra.mxu0 %v2243_v6  ;;  %478 = vmatpush1.bf16.msra.mxu1 %v2245_v10  ;;  %v2253_v20 = vcombine.low %v185_v12, %v189_v13  ;;  %v162_v41 = vrot.slane %v110_v34, 1  ;;  %v182_v50 = vld [vmem:[#allocation7 + $0x150] sm:$0xff]  ;;  %v164_v5 = vrot.slane %v111_v55, 1  ;;  %v165_v6 = vrot.slane %v112_v56, 1  ;;  %p2922_p12 = scmp.ne.s32.totalorder %s2231_s11, %s2921_s12  ;;  %p2926_p13 = scmp.lt.s32.totalorder %s2231_s11, %s2231_s11 }
  0x61   :  { %426 = vmatprep.subr.bf16.mxu0 %v2252_v11  ;;  %v2260_v21 = vcombine.high %v192_v14, %v196_v16  ;;  %479 = vmatprep.subr.bf16.mxu1 %v2254_v15  ;;  %v2262_v22 = vcombine.high %v193_v17, %v197_v18  ;;  %v200_v23 = vld [vmem:[#allocation7 + $0x1e0] sm:$0xff]  ;;  %v201_v25 = vld [vmem:[#allocation7 + $0x1e8] sm:$0xff]  ;;  %v2259_v29 = vcombine.low %v192_v14, %v196_v16  ;;  %v179_v51 = vld [vmem:[#allocation7 + $0x138] sm:$0xff]  ;;  %v167_v7 = vrot.slane %v113_v57, 1  ;;  %p2927_p0 = scmp.lt.s32.totalorder %s2925_s13, %s2921_s12 }
  0x62   :  { %v204_v24 = vld [vmem:[#allocation7 + $0x200] sm:$0xff]  ;;  %v205_v26 = vld [vmem:[#allocation7 + $0x208] sm:$0xff]  ;;  %v2261_v32 = vcombine.low %v193_v17, %v197_v18  ;;  %v183_v52 = vld [vmem:[#allocation7 + $0x158] sm:$0xff]  ;;  %v2248_v59 = vcombine.high %v178_v49, %v182_v50  ;;  %v2247_v4 = vcombine.low %v178_v49, %v182_v50  ;;  %v166_v16 = vsel %vm158_vm0, %v164_v5, %v165_v6 }
  0x63   :  { %v3062_v27 = vld [vmem:[#allocation4] sm:$0xff]   ;;  %v2268_v33 = vcombine.high %v200_v23, %v204_v24  ;;  %v2270_v35 = vcombine.high %v201_v25, %v205_v26  ;;  %v208_v36 = vld [vmem:[#allocation7 + $0x220] sm:$0xff]  ;;  %v2267_v40 = vcombine.low %v200_v23, %v204_v24  ;;  %v2269_v42 = vcombine.low %v201_v25, %v205_v26  ;;  %v186_v62 = vld [vmem:[#allocation7 + $0x170] sm:$0xff]  ;;  %p2928_p1 = por %p2927_p0, %p2926_p13 }
  0x64   :  { %427 = vmatpush1.bf16.msra.mxu0 %v2251_v19  ;;  %v108_v30 = vunpack.c.l.bf16 %v3062_v27  ;;  %v109_v31 = vunpack.c.h.bf16 %v3062_v27  ;;  %480 = vmatpush1.bf16.msra.mxu1 %v2253_v20  ;;  %v209_v37 = vld [vmem:[#allocation7 + $0x228] sm:$0xff]  ;;  %v2276_v43 = vcombine.high %v208_v36, %v208_v36  ;;  %v2275_v44 = vcombine.low %v208_v36, %v208_v36  ;;  %v190_v63 = vld [vmem:[#allocation7 + $0x190] sm:$0xff]  ;;  %v187_v2 = vld [vmem:[#allocation7 + $0x178] sm:$0xff] }
  0x65   :  { %428 = vmatprep.subr.bf16.mxu0 %v2260_v21  ;;  %481 = vmatprep.subr.bf16.mxu1 %v2262_v22  ;;  %v2278_v47 = vcombine.high %v209_v37, %v209_v37  ;;  %v2277_v48 = vcombine.low %v209_v37, %v209_v37  ;;  %v2250_v61 = vcombine.high %v179_v51, %v183_v52  ;;  %v191_v3 = vld [vmem:[#allocation7 + $0x198] sm:$0xff]  ;;  %v194_v11 = vld [vmem:[#allocation7 + $0x1b0] sm:$0xff]  ;;  %v117_v28 = vld [vmem:[#allocation7 + $0x8] sm:$0xff]  ;;  %v1065_v49 = vrot.slane %v112_v56, 2  ;;  %p2929_p2 = pnand %p2928_p1, %p2922_p12 }
  0x66   :  { %v159_v38 = vrot.slane %v108_v30, 1  ;;  %v160_v39 = vrot.slane %v109_v31, 1  ;;  %v401_v58 = vsel %vm399_vm1, %v2275_v44, 0  ;;  %v2249_v8 = vcombine.low %v179_v51, %v183_v52  ;;  %v198_v12 = vld [vmem:[#allocation7 + $0x1d0] sm:$0xff]  ;;  %v195_v13 = vld [vmem:[#allocation7 + $0x1b8] sm:$0xff]  ;;  %v124_v46 = vld [vmem:[#allocation7 + $0x40] sm:$0xff] }
  0x67   :  { %v407_v60 = vsel %vm399_vm1, %v2277_v48, 0  ;;  %v2256_v9 = vcombine.high %v186_v62, %v190_v63  ;;  %v2258_v10 = vcombine.high %v187_v2, %v191_v3  ;;  %v199_v14 = vld [vmem:[#allocation7 + $0x1d8] sm:$0xff]  ;;  %v2255_v15 = vcombine.low %v186_v62, %v190_v63  ;;  %v202_v21 = vld [vmem:[#allocation7 + $0x1f0] sm:$0xff] }
  0x68   :  { %429 = vmatpush1.bf16.msra.mxu0 %v2259_v29  ;;  %482 = vmatpush1.bf16.msra.mxu1 %v2261_v32  ;;  %v161_v53 = vsel %vm158_vm0, %v159_v38, %v160_v39  ;;  %v163_v54 = vsel %vm158_vm0, %v160_v39, %v162_v41  ;;  %v168_v17 = vsel %vm158_vm0, %v165_v6, %v167_v7  ;;  %v206_v22 = vld [vmem:[#allocation7 + $0x210] sm:$0xff]  ;;  %v203_v23 = vld [vmem:[#allocation7 + $0x1f8] sm:$0xff]  ;;  %v1059_v37 = vrot.slane %v108_v30, 2  ;;  %v132_v6 = vld [vmem:[#allocation7 + $0x80] sm:$0xff] }
  0x69   :  { %430 = vmatprep.subr.bf16.mxu0 %v2268_v33  ;;  %483 = vmatprep.subr.bf16.mxu1 %v2270_v35  ;;  %v3088_v1 = vpack.c.bf16 %v163_v54, %v161_v53  ;;  %v2257_v18 = vcombine.low %v187_v2, %v191_v3  ;;  %v2264_v19 = vcombine.high %v194_v11, %v198_v12  ;;  %v207_v24 = vld [vmem:[#allocation7 + $0x218] sm:$0xff]  ;;  %v210_v35 = vld [vmem:[#allocation7 + $0x230] sm:$0xff]  ;;  %v1060_v38 = vrot.slane %v109_v31, 2  ;;  %v116_v31 = vld [vmem:[#allocation7] sm:$0xff] }
  0x6a   :  { %v2266_v20 = vcombine.high %v195_v13, %v199_v14  ;;  %v3104_v25 = vpack.c.bf16 %v168_v17, %v166_v16  ;;  %v2263_v26 = vcombine.low %v194_v11, %v198_v12  ;;  %v2265_v29 = vcombine.low %v195_v13, %v199_v14  ;;  %v211_v36 = vld [vmem:[#allocation7 + $0x238] sm:$0xff]  ;;  %v136_v7 = vld [vmem:[#allocation7 + $0xa0] sm:$0xff]  ;;  %v141_v16 = vld [vmem:[#allocation7 + $0xc8] sm:$0xff] }
  0x6b   :  { %v2272_v32 = vcombine.high %v202_v21, %v206_v22  ;;  %v2274_v33 = vcombine.high %v203_v23, %v207_v24  ;;  %v1062_v39 = vrot.slane %v110_v34, 2  ;;  %v2273_v41 = vcombine.low %v203_v23, %v207_v24  ;;  %v121_v34 = vld [vmem:[#allocation7 + $0x28] sm:$0xff]  ;;  %v140_v14 = vld [vmem:[#allocation7 + $0xc0] sm:$0xff] }
  0x6c   :  { %431 = vmatpush1.bf16.msra.mxu0 %v2267_v40  ;;  %484 = vmatpush1.bf16.msra.mxu1 %v2269_v42  ;;  %v2271_v40 = vcombine.low %v202_v21, %v206_v22  ;;  %v2280_v42 = vcombine.high %v210_v35, %v210_v35  ;;  %v2282_v44 = vcombine.high %v211_v36, %v211_v36  ;;  %v1064_v48 = vrot.slane %v111_v55, 2  ;;  %v145_v17 = vld [vmem:[#allocation7 + $0xe8] sm:$0xff]  ;;  %v148_v21 = vld [vmem:[#allocation7 + $0x100] sm:$0xff] }
  0x6d   :  { %2283 = vmatprep.subr.msk.bf16.mxu0 %vm399_vm1, %v2276_v43  ;;  %2286 = vmatprep.subr.msk.bf16.mxu1 %vm399_vm1, %v2278_v47  ;;  %v2279_v43 = vcombine.low %v210_v35, %v210_v35  ;;  %v2281_v30 = vcombine.low %v211_v36, %v211_v36  ;;  %v120_v47 = vld [vmem:[#allocation7 + $0x20] sm:$0xff]  ;;  %v1067_v50 = vrot.slane %v113_v57, 2  ;;  %v1061_v51 = vsel %vm1058_vm3, %v1059_v37, %v1060_v38  ;;  %v149_v22 = vld [vmem:[#allocation7 + $0x108] sm:$0xff]  ;;  %v118_v35 = vld [vmem:[#allocation7 + $0x10] sm:$0xff] }
  0x6e   :  { %v1063_v52 = vsel %vm1058_vm3, %v1060_v38, %v1062_v39  ;;  %v2296_v54 = vcombine.high %v116_v31, %v120_v47  ;;  %v2298_v56 = vcombine.high %v117_v28, %v121_v34  ;;  %v128_v57 = vld [vmem:[#allocation7 + $0x60] sm:$0xff]  ;;  %v2295_v63 = vcombine.low %v116_v31, %v120_v47  ;;  %v122_v36 = vld [vmem:[#allocation7 + $0x30] sm:$0xff]  ;;  %v119_v37 = vld [vmem:[#allocation7 + $0x18] sm:$0xff] }
  0x6f   :  { %v413_v53 = vsel %vm399_vm1, %v2279_v43, 0  ;;  %v419_v55 = vsel %vm399_vm1, %v2281_v30, 0  ;;  %v1068_v62 = vsel %vm1058_vm3, %v1065_v49, %v1067_v50  ;;  %v2297_v3 = vcombine.low %v117_v28, %v121_v34  ;;  %v123_v38 = vld [vmem:[#allocation7 + $0x38] sm:$0xff]  ;;  %v130_v43 = vld [vmem:[#allocation7 + $0x70] sm:$0xff] }
  0x70   :  { %433 = vmatpush1.bf16.msra.mxu0 %v401_v58  ;;  %486 = vmatpush1.bf16.msra.mxu1 %v407_v60  ;;  %v3128_v58 = vpack.c.bf16 %v1063_v52, %v1061_v51  ;;  %v129_v60 = vld [vmem:[#allocation7 + $0x68] sm:$0xff]  ;;  %v2312_v12 = vcombine.high %v132_v6, %v136_v7  ;;  %v2321_v24 = vcombine.low %v141_v16, %v145_v17  ;;  %v131_v30 = vld [vmem:[#allocation7 + $0x78] sm:$0xff]  ;;  %vm2155_vm5 = vcmask 130048  }
  0x71   :  { %530 = vmatprep.subr.bf16.mxu0 %v2248_v59  ;;  %583 = vmatprep.subr.bf16.mxu1 %v2250_v61  ;;  %v125_v59 = vld [vmem:[#allocation7 + $0x48] sm:$0xff]  ;;  %v1066_v61 = vsel %vm1058_vm3, %v1064_v48, %v1065_v49  ;;  %v2300_v39 = vcombine.high %v118_v35, %v122_v36  ;;  %v2299_v31 = vcombine.low %v118_v35, %v122_v36  ;;  %v134_v48 = vld [vmem:[#allocation7 + $0x90] sm:$0xff]  ;;  %v135_v50 = vld [vmem:[#allocation7 + $0x98] sm:$0xff]  ;;  %vm2202_vm7 = vcmask 1041409  }
  0x72   :  { %v3134_v2 = vpack.c.bf16 %v1068_v62, %v1066_v61  ;;  %v2306_v5 = vcombine.high %v125_v59, %v129_v60  ;;  %v2305_v11 = vcombine.low %v125_v59, %v129_v60  ;;  %v2301_v47 = vcombine.low %v119_v37, %v123_v38  ;;  %v138_v49 = vld [vmem:[#allocation7 + $0xb0] sm:$0xff]  ;;  %v139_v51 = vld [vmem:[#allocation7 + $0xb8] sm:$0xff]  ;;  %v1097_v35 = vld [vmem:[#allocation7 + $0x2e8] sm:$0xff] }
  0x73   :  { %2284 = vmatmul.mubr.msk.bf16.vlgmr.msra.gmra.mrb[0].mxu0 %vm392_vm2, %v3088_v1  ;;  %2287 = vmatmul.mubr.msk.bf16.vlgmr.msra.gmra.mrb[0].mxu1 %vm392_vm2, %v3088_v1  ;;  %v147_v59 = vld [vmem:[#allocation7 + $0xf8] sm:$0xff]  ;;  %v2315_v60 = vcombine.low %v134_v48, %v138_v49  ;;  %v2317_v61 = vcombine.low %v135_v50, %v139_v51  ;;  %vm2205_vm8 = vcmask 1024  }
  0x74   :  { %531 = vmatpush1.bf16.msra.mxu0 %v2247_v4  ;;  %584 = vmatpush1.bf16.msra.mxu1 %v2249_v8  ;;  %v2304_v4 = vcombine.high %v124_v46, %v128_v57  ;;  %v133_v8 = vld [vmem:[#allocation7 + $0x88] sm:$0xff] }
  0x75   :  { %532 = vmatprep.subr.bf16.mxu0 %v2256_v9  ;;  %585 = vmatprep.subr.bf16.mxu1 %v2258_v10  ;;  %v137_v9 = vld [vmem:[#allocation7 + $0xa8] sm:$0xff]  ;;  %v2303_v10 = vcombine.low %v124_v46, %v128_v57  ;;  %v146_v46 = vld [vmem:[#allocation7 + $0xf0] sm:$0xff]  ;;  %v143_v57 = vld [vmem:[#allocation7 + $0xd8] sm:$0xff] }
  0x76   :  { %466 = vmatprep.mubr.bf16.mxu0 %v2962_v0  ;;  %519 = vmatprep.mubr.bf16.mxu1 %v2962_v0  ;;  %v2314_v13 = vcombine.high %v133_v8, %v137_v9 }
  0x78   :  { %533 = vmatpush1.bf16.msra.mxu0 %v2255_v15  ;;  %586 = vmatpush1.bf16.msra.mxu1 %v2257_v18  ;;  %v144_v15 = vld [vmem:[#allocation7 + $0xe0] sm:$0xff]  ;;  %v2311_v18 = vcombine.low %v132_v6, %v136_v7  ;;  %v2325_v6 = vcombine.low %v143_v57, %v147_v59 }
  0x79   :  { %534 = vmatprep.subr.bf16.mxu0 %v2264_v19  ;;  %587 = vmatprep.subr.bf16.mxu1 %v2266_v20  ;;  %v2320_v19 = vcombine.high %v140_v14, %v144_v15  ;;  %v2322_v20 = vcombine.high %v141_v16, %v145_v17  ;;  %v2319_v23 = vcombine.low %v140_v14, %v144_v15  ;;  %v1081_v14 = vld [vmem:[#allocation7 + $0x268] sm:$0xff] }
  0x7b   :  { %2285 = vmatmul.mubr.msk.bf16.gmra.mrb[4].mxu0 %vm392_vm2, %v3104_v25  ;;  %2288 = vmatmul.mubr.msk.bf16.gmra.mrb[4].mxu1 %vm392_vm2, %v3104_v25 }
  0x7c   :  { %535 = vmatpush1.bf16.msra.mxu0 %v2263_v26  ;;  %588 = vmatpush1.bf16.msra.mxu1 %v2265_v29  ;;  %v2328_v26 = vcombine.high %v148_v21, %v148_v21  ;;  %v2327_v29 = vcombine.low %v148_v21, %v148_v21  ;;  %v1089_v21 = vld [vmem:[#allocation7 + $0x2a8] sm:$0xff] }
  0x7d   :  { %536 = vmatprep.subr.bf16.mxu0 %v2272_v32  ;;  %589 = vmatprep.subr.bf16.mxu1 %v2274_v33  ;;  %v2330_v32 = vcombine.high %v149_v22, %v149_v22  ;;  %v2329_v33 = vcombine.low %v149_v22, %v149_v22 }
  0x7e   :  { %562 = vmatprep.mubr.bf16.mxu0 %v2962_v0  ;;  %615 = vmatprep.mubr.bf16.mxu1 %v2962_v0 }
  0x80   :  { %537 = vmatpush1.bf16.msra.mxu0 %v2271_v40  ;;  %590 = vmatpush1.bf16.msra.mxu1 %v2273_v41  ;;  %v829_v40 = vsel %vm399_vm1, %v2329_v33, 0  ;;  %v2302_v41 = vcombine.high %v119_v37, %v123_v38  ;;  %v1093_v33 = vld [vmem:[#allocation7 + $0x2c8] sm:$0xff] }
  0x81   :  { %2289 = vmatprep.subr.msk.bf16.mxu0 %vm399_vm1, %v2280_v42  ;;  %2292 = vmatprep.subr.msk.bf16.mxu1 %vm399_vm1, %v2282_v44  ;;  %v126_v42 = vld [vmem:[#allocation7 + $0x50] sm:$0xff]  ;;  %v127_v44 = vld [vmem:[#allocation7 + $0x58] sm:$0xff] }
  0x82   :  { %v2308_v28 = vcombine.high %v126_v42, %v130_v43  ;;  %v2310_v34 = vcombine.high %v127_v44, %v131_v30  ;;  %v2307_v52 = vcombine.low %v126_v42, %v130_v43  ;;  %v1105_v42 = vld [vmem:[#allocation7 + $0x328] sm:$0xff] }
  0x84   :  { %539 = vmatpush1.bf16.msra.mxu0 %v413_v53  ;;  %592 = vmatpush1.bf16.msra.mxu1 %v419_v55  ;;  %v2309_v53 = vcombine.low %v127_v44, %v131_v30  ;;  %v2318_v55 = vcombine.high %v135_v50, %v139_v51 }
  0x85   :  { %846 = vmatprep.subr.bf16.mxu0 %v2296_v54  ;;  %899 = vmatprep.subr.bf16.mxu1 %v2298_v56  ;;  %v2316_v54 = vcombine.high %v134_v48, %v138_v49  ;;  %v142_v56 = vld [vmem:[#allocation7 + $0xd0] sm:$0xff] }
  0x86   :  { %v2324_v62 = vcombine.high %v142_v56, %v146_v46 }
  0x87   :  { %2290 = vmatmul.mubr.msk.bf16.vlgmr.msra.gmra.mrb[8].mxu0 %vm392_vm2, %v3088_v1  ;;  %2293 = vmatmul.mubr.msk.bf16.vlgmr.msra.gmra.mrb[8].mxu1 %vm392_vm2, %v3088_v1  ;;  %v2313_v1 = vcombine.low %v133_v8, %v137_v9 }
  0x88   :  { %847 = vmatpush1.bf16.msra.mxu0 %v2295_v63  ;;  %900 = vmatpush1.bf16.msra.mxu1 %v2297_v3  ;;  %v2326_v63 = vcombine.high %v143_v57, %v147_v59  ;;  %v150_v3 = vld [vmem:[#allocation7 + $0x110] sm:$0xff] }
  0x89   :  { %848 = vmatprep.subr.bf16.mxu0 %v2304_v4  ;;  %901 = vmatprep.subr.bf16.mxu1 %v2306_v5  ;;  %v151_v4 = vld [vmem:[#allocation7 + $0x118] sm:$0xff]  ;;  %v2323_v5 = vcombine.low %v142_v56, %v146_v46  ;;  %v2332_v7 = vcombine.high %v150_v3, %v150_v3  ;;  %v2331_v8 = vcombine.low %v150_v3, %v150_v3  ;;  %v1086_v59 = vld [vmem:[#allocation7 + $0x290] sm:$0xff] }
  0x8a   :  { %572 = vmatprep.mubr.bf16.mxu0 %v2962_v0  ;;  %625 = vmatprep.mubr.bf16.mxu1 %v2962_v0  ;;  %v2334_v9 = vcombine.high %v151_v4, %v151_v4 }
  0x8b   :  { %v835_v15 = vsel %vm399_vm1, %v2331_v8, 0  ;;  %v1095_v8 = vld [vmem:[#allocation7 + $0x2d8] sm:$0xff] }
  0x8c   :  { %849 = vmatpush1.bf16.msra.mxu0 %v2303_v10  ;;  %902 = vmatpush1.bf16.msra.mxu1 %v2305_v11  ;;  %v2333_v10 = vcombine.low %v151_v4, %v151_v4  ;;  %v1076_v11 = vld [vmem:[#allocation7 + $0x240] sm:$0xff] }
  0x8d   :  { %850 = vmatprep.subr.bf16.mxu0 %v2312_v12  ;;  %903 = vmatprep.subr.bf16.mxu1 %v2314_v13  ;;  %v1080_v12 = vld [vmem:[#allocation7 + $0x260] sm:$0xff]  ;;  %v1077_v13 = vld [vmem:[#allocation7 + $0x248] sm:$0xff] }
  0x8e   :  { %v2348_v16 = vcombine.high %v1076_v11, %v1080_v12  ;;  %v841_v17 = vsel %vm399_vm1, %v2333_v10, 0  ;;  %v2347_v22 = vcombine.low %v1076_v11, %v1080_v12 }
  0x8f   :  { %2291 = vmatmul.mubr.msk.bf16.gmra.mrb[12].mxu0 %vm392_vm2, %v3104_v25  ;;  %2294 = vmatmul.mubr.msk.bf16.gmra.mrb[12].mxu1 %vm392_vm2, %v3104_v25  ;;  %v823_v25 = vsel %vm399_vm1, %v2327_v29, 0  ;;  %v1092_v29 = vld [vmem:[#allocation7 + $0x2c0] sm:$0xff] }
  0x90   :  { %851 = vmatpush1.bf16.msra.mxu0 %v2311_v18  ;;  %904 = vmatpush1.bf16.msra.mxu1 %v2313_v1  ;;  %v2350_v18 = vcombine.high %v1077_v13, %v1081_v14  ;;  %v1084_v1 = vld [vmem:[#allocation7 + $0x280] sm:$0xff] }
  0x91   :  { %852 = vmatprep.subr.bf16.mxu0 %v2320_v19  ;;  %905 = vmatprep.subr.bf16.mxu1 %v2322_v20  ;;  %v1088_v19 = vld [vmem:[#allocation7 + $0x2a0] sm:$0xff]  ;;  %v1085_v20 = vld [vmem:[#allocation7 + $0x288] sm:$0xff] }
  0x92   :  { %878 = vmatprep.mubr.bf16.mxu0 %v2962_v0  ;;  %931 = vmatprep.mubr.bf16.mxu1 %v2962_v0  ;;  %v2355_v36 = vcombine.low %v1084_v1, %v1088_v19  ;;  %v2357_v37 = vcombine.low %v1085_v20, %v1089_v21 }
  0x94   :  { %853 = vmatpush1.bf16.msra.mxu0 %v2319_v23  ;;  %906 = vmatpush1.bf16.msra.mxu1 %v2321_v24  ;;  %v2349_v23 = vcombine.low %v1077_v13, %v1081_v14  ;;  %v2356_v24 = vcombine.high %v1084_v1, %v1088_v19  ;;  %v1102_v14 = vld [vmem:[#allocation7 + $0x310] sm:$0xff] }
  0x95   :  { %2335 = vmatprep.subr.msk.bf16.mxu0 %vm399_vm1, %v2328_v26  ;;  %2338 = vmatprep.subr.msk.bf16.mxu1 %vm399_vm1, %v2330_v32  ;;  %v2358_v26 = vcombine.high %v1085_v20, %v1089_v21  ;;  %v1096_v32 = vld [vmem:[#allocation7 + $0x2e0] sm:$0xff]  ;;  %v1110_v21 = vld [vmem:[#allocation7 + $0x350] sm:$0xff] }
  0x96   :  { %v2364_v38 = vcombine.high %v1092_v29, %v1096_v32  ;;  %v2363_v43 = vcombine.low %v1092_v29, %v1096_v32  ;;  %v2383_v29 = vcombine.low %v1110_v21, %v1110_v21 }
  0x98   :  { %855 = vmatpush1.bf16.msra.mxu0 %v823_v25  ;;  %908 = vmatpush1.bf16.msra.mxu1 %v829_v40  ;;  %v2366_v25 = vcombine.high %v1093_v33, %v1097_v35  ;;  %v1104_v40 = vld [vmem:[#allocation7 + $0x320] sm:$0xff] }
  0x99   :  { %952 = vmatprep.subr.bf16.mxu0 %v2300_v39  ;;  %1005 = vmatprep.subr.bf16.mxu1 %v2302_v41  ;;  %v1100_v39 = vld [vmem:[#allocation7 + $0x300] sm:$0xff]  ;;  %v1101_v41 = vld [vmem:[#allocation7 + $0x308] sm:$0xff] }
  0x9a   :  { %v2372_v44 = vcombine.high %v1100_v39, %v1104_v40  ;;  %v2374_v30 = vcombine.high %v1101_v41, %v1105_v42 }
  0x9b   :  { %2336 = vmatmul.mubr.msk.bf16.vlgmr.msra.gmra.mrb[0].mxu0 %vm392_vm2, %v3062_v27  ;;  %2339 = vmatmul.mubr.msk.bf16.vlgmr.msra.gmra.mrb[0].mxu1 %vm392_vm2, %v3062_v27 }
  0x9c   :  { %953 = vmatpush1.bf16.msra.mxu0 %v2299_v31  ;;  %1006 = vmatpush1.bf16.msra.mxu1 %v2301_v47  ;;  %v1108_v31 = vld [vmem:[#allocation7 + $0x340] sm:$0xff]  ;;  %v1109_v47 = vld [vmem:[#allocation7 + $0x348] sm:$0xff] }
  0x9d   :  { %954 = vmatprep.subr.bf16.mxu0 %v2308_v28  ;;  %1007 = vmatprep.subr.bf16.mxu1 %v2310_v34  ;;  %v2371_v28 = vcombine.low %v1100_v39, %v1104_v40  ;;  %v2373_v34 = vcombine.low %v1101_v41, %v1105_v42  ;;  %v2380_v48 = vcombine.high %v1108_v31, %v1108_v31  ;;  %v1672_v42 = vld [vmem:[#allocation10] sm:$0xff] }
  0x9e   :  { %888 = vmatprep.mubr.bf16.mxu0 %v2962_v0  ;;  %941 = vmatprep.mubr.bf16.mxu1 %v2962_v0  ;;  %v2379_v49 = vcombine.low %v1108_v31, %v1108_v31  ;;  %v2382_v50 = vcombine.high %v1109_v47, %v1109_v47  ;;  %v2381_v51 = vcombine.low %v1109_v47, %v1109_v47  ;;  %v1691_v31 = vld [vmem:[#allocation10 + $0x98] sm:$0xff]  ;;  %v1722_v47 = vld [vmem:[#allocation10 + $0x190] sm:$0xff] }
  0xa0   :  { %955 = vmatpush1.bf16.msra.mxu0 %v2307_v52  ;;  %1008 = vmatpush1.bf16.msra.mxu1 %v2309_v53  ;;  %v1078_v52 = vld [vmem:[#allocation7 + $0x250] sm:$0xff]  ;;  %v1305_v46 = vsel %vm399_vm1, %v2381_v51, 0  ;;  %v1675_v51 = vld [vmem:[#allocation10 + $0x18] sm:$0xff] }
  0xa1   :  { %956 = vmatprep.subr.bf16.mxu0 %v2316_v54  ;;  %1009 = vmatprep.subr.bf16.mxu1 %v2318_v55  ;;  %v1082_v53 = vld [vmem:[#allocation7 + $0x270] sm:$0xff]  ;;  %v1079_v54 = vld [vmem:[#allocation7 + $0x258] sm:$0xff] }
  0xa2   :  { %v1083_v55 = vld [vmem:[#allocation7 + $0x278] sm:$0xff]  ;;  %v2352_v56 = vcombine.high %v1078_v52, %v1082_v53 }
  0xa3   :  { %2337 = vmatmul.mubr.msk.bf16.gmra.mrb[4].mxu0 %vm392_vm2, %v3075_v45  ;;  %2340 = vmatmul.mubr.msk.bf16.gmra.mrb[4].mxu1 %vm392_vm2, %v3075_v45  ;;  %v2354_v57 = vcombine.high %v1079_v54, %v1083_v55  ;;  %v2353_v3 = vcombine.low %v1079_v54, %v1083_v55  ;;  %v1707_v54 = vld [vmem:[#allocation10 + $0x118] sm:$0xff]  ;;  %v1692_v55 = vld [vmem:[#allocation10 + $0xa0] sm:$0xff] }
  0xa4   :  { %957 = vmatpush1.bf16.msra.mxu0 %v2315_v60  ;;  %1010 = vmatpush1.bf16.msra.mxu1 %v2317_v61  ;;  %v1090_v60 = vld [vmem:[#allocation7 + $0x2b0] sm:$0xff]  ;;  %v1087_v61 = vld [vmem:[#allocation7 + $0x298] sm:$0xff] }
  0xa5   :  { %958 = vmatprep.subr.bf16.mxu0 %v2324_v62  ;;  %1011 = vmatprep.subr.bf16.mxu1 %v2326_v63  ;;  %v1091_v62 = vld [vmem:[#allocation7 + $0x2b8] sm:$0xff]  ;;  %v2351_v63 = vcombine.low %v1078_v52, %v1082_v53  ;;  %v2360_v4 = vcombine.high %v1086_v59, %v1090_v60  ;;  %v2359_v10 = vcombine.low %v1086_v59, %v1090_v60 }
  0xa6   :  { %984 = vmatprep.mubr.bf16.mxu0 %v2962_v0  ;;  %1037 = vmatprep.mubr.bf16.mxu1 %v2962_v0  ;;  %v2361_v11 = vcombine.low %v1087_v61, %v1091_v62  ;;  %v1706_v52 = vld [vmem:[#allocation10 + $0x110] sm:$0xff] }
  0xa7   :  { %v2613_v59 = vpack.c.bf16 %v1707_v54, %v1706_v52  ;;  %v1703_v54 = vld [vmem:[#allocation10 + $0xf8] sm:$0xff] }
  0xa8   :  { %959 = vmatpush1.bf16.msra.mxu0 %v2323_v5  ;;  %1012 = vmatpush1.bf16.msra.mxu1 %v2325_v6  ;;  %v2362_v5 = vcombine.high %v1087_v61, %v1091_v62  ;;  %v1094_v6 = vld [vmem:[#allocation7 + $0x2d0] sm:$0xff]  ;;  %v1676_v61 = vld [vmem:[#allocation10 + $0x20] sm:$0xff] }
  0xa9   :  { %2341 = vmatprep.subr.msk.bf16.mxu0 %vm399_vm1, %v2332_v7  ;;  %2344 = vmatprep.subr.msk.bf16.mxu1 %vm399_vm1, %v2334_v9  ;;  %v1098_v7 = vld [vmem:[#allocation7 + $0x2f0] sm:$0xff]  ;;  %v1099_v9 = vld [vmem:[#allocation7 + $0x2f8] sm:$0xff] }
  0xaa   :  { %v2368_v12 = vcombine.high %v1094_v6, %v1098_v7  ;;  %v2370_v13 = vcombine.high %v1095_v8, %v1099_v9  ;;  %v2369_v1 = vcombine.low %v1095_v8, %v1099_v9  ;;  %v1677_v62 = vld [vmem:[#allocation10 + $0x28] sm:$0xff] }
  0xab   :  { %v2585_v8 = vpack.c.bf16 %v1677_v62, %v1676_v61  ;;  %v1718_v61 = vld [vmem:[#allocation10 + $0x170] sm:$0xff]  ;;  %v1719_v62 = vld [vmem:[#allocation10 + $0x178] sm:$0xff] }
  0xac   :  { %961 = vmatpush1.bf16.msra.mxu0 %v835_v15  ;;  %1014 = vmatpush1.bf16.msra.mxu1 %v841_v17  ;;  %v1106_v15 = vld [vmem:[#allocation7 + $0x330] sm:$0xff]  ;;  %v1107_v17 = vld [vmem:[#allocation7 + $0x338] sm:$0xff] }
  0xad   :  { %1322 = vmatprep.subr.bf16.mxu0 %v2348_v16  ;;  %1375 = vmatprep.subr.bf16.mxu1 %v2350_v18  ;;  %v1103_v16 = vld [vmem:[#allocation7 + $0x318] sm:$0xff]  ;;  %v2367_v18 = vcombine.low %v1094_v6, %v1098_v7  ;;  %v2376_v19 = vcombine.high %v1102_v14, %v1106_v15  ;;  %v1727_v7 = vld [vmem:[#allocation10 + $0x1b8] sm:$0xff] }
  0xae   :  { %v2378_v20 = vcombine.high %v1103_v16, %v1107_v17  ;;  %v1726_v6 = vld [vmem:[#allocation10 + $0x1b0] sm:$0xff] }
  0xaf   :  { %2342 = vmatmul.mubr.msk.bf16.vlgmr.msra.gmra.mrb[8].mxu0 %vm392_vm2, %v3062_v27  ;;  %2345 = vmatmul.mubr.msk.bf16.vlgmr.msra.gmra.mrb[8].mxu1 %vm392_vm2, %v3062_v27  ;;  %v2365_v27 = vcombine.low %v1093_v33, %v1097_v35  ;;  %v1688_v35 = vld [vmem:[#allocation10 + $0x80] sm:$0xff] }
  0xb0   :  { %1323 = vmatpush1.bf16.msra.mxu0 %v2347_v22  ;;  %1376 = vmatpush1.bf16.msra.mxu1 %v2349_v23  ;;  %v1111_v22 = vld [vmem:[#allocation7 + $0x358] sm:$0xff]  ;;  %v2375_v23 = vcombine.low %v1102_v14, %v1106_v15  ;;  %v1711_v14 = vld [vmem:[#allocation10 + $0x138] sm:$0xff]  ;;  %v1696_v15 = vld [vmem:[#allocation10 + $0xc0] sm:$0xff] }
  0xb1   :  { %1324 = vmatprep.subr.bf16.mxu0 %v2356_v24  ;;  %1377 = vmatprep.subr.bf16.mxu1 %v2358_v26  ;;  %v2377_v24 = vcombine.low %v1103_v16, %v1107_v17  ;;  %v2384_v26 = vcombine.high %v1110_v21, %v1110_v21  ;;  %v2386_v32 = vcombine.high %v1111_v22, %v1111_v22  ;;  %v1697_v16 = vld [vmem:[#allocation10 + $0xc8] sm:$0xff]  ;;  %v1728_v17 = vld [vmem:[#allocation10 + $0x1c0] sm:$0xff] }
  0xb2   :  { %994 = vmatprep.mubr.bf16.mxu0 %v2962_v0  ;;  %1047 = vmatprep.mubr.bf16.mxu1 %v2962_v0  ;;  %v2385_v33 = vcombine.low %v1111_v22, %v1111_v22  ;;  %v1680_v21 = vld [vmem:[#allocation10 + $0x40] sm:$0xff]  ;;  %v1681_v22 = vld [vmem:[#allocation10 + $0x48] sm:$0xff] }
  0xb4   :  { %1325 = vmatpush1.bf16.msra.mxu0 %v2355_v36  ;;  %1378 = vmatpush1.bf16.msra.mxu1 %v2357_v37  ;;  %v1689_v36 = vld [vmem:[#allocation10 + $0x88] sm:$0xff]  ;;  %v1720_v37 = vld [vmem:[#allocation10 + $0x180] sm:$0xff]  ;;  %v1317_v40 = vsel %vm399_vm1, %v2385_v33, 0  ;;  %v1730_v33 = vld [vmem:[#allocation10 + $0x1d0] sm:$0xff] }
  0xb5   :  { %1326 = vmatprep.subr.bf16.mxu0 %v2364_v38  ;;  %1379 = vmatprep.subr.bf16.mxu1 %v2366_v25  ;;  %v1721_v38 = vld [vmem:[#allocation10 + $0x188] sm:$0xff]  ;;  %v1311_v25 = vsel %vm399_vm1, %v2383_v29, 0  ;;  %v2575_v39 = vpack.c.bf16 %v1689_v36, %v1688_v35  ;;  %v1698_v29 = vld [vmem:[#allocation10 + $0xd0] sm:$0xff]  ;;  %v1731_v35 = vld [vmem:[#allocation10 + $0x1d8] sm:$0xff] }
  0xb6   :  { %v2607_v41 = vpack.c.bf16 %v1721_v38, %v1720_v37  ;;  %v1682_v38 = vld [vmem:[#allocation10 + $0x50] sm:$0xff] }
  0xb7   :  { %2343 = vmatmul.mubr.msk.bf16.gmra.mrb[12].mxu0 %vm392_vm2, %v3075_v45  ;;  %2346 = vmatmul.mubr.msk.bf16.gmra.mrb[12].mxu1 %vm392_vm2, %v3075_v45  ;;  %v1299_v45 = vsel %vm399_vm1, %v2379_v49, 0 }
  0xb8   :  { %1327 = vmatpush1.bf16.msra.mxu0 %v2363_v43  ;;  %1380 = vmatpush1.bf16.msra.mxu1 %v2365_v27  ;;  %v1673_v43 = vld [vmem:[#allocation10 + $0x8] sm:$0xff]  ;;  %v1704_v27 = vld [vmem:[#allocation10 + $0x100] sm:$0xff] }
  0xb9   :  { %1328 = vmatprep.subr.bf16.mxu0 %v2372_v44  ;;  %1381 = vmatprep.subr.bf16.mxu1 %v2374_v30  ;;  %v1705_v44 = vld [vmem:[#allocation10 + $0x108] sm:$0xff]  ;;  %v1690_v30 = vld [vmem:[#allocation10 + $0x90] sm:$0xff] }
  0xba   :  { %1354 = vmatprep.mubr.bf16.mxu0 %v2962_v0  ;;  %1407 = vmatprep.mubr.bf16.mxu1 %v2962_v0  ;;  %v2579_v49 = vpack.c.bf16 %v1691_v31, %v1690_v30 }
  0xbc   :  { %1329 = vmatpush1.bf16.msra.mxu0 %v2371_v28  ;;  %1382 = vmatpush1.bf16.msra.mxu1 %v2373_v34  ;;  %v1723_v28 = vld [vmem:[#allocation10 + $0x198] sm:$0xff]  ;;  %v2577_v34 = vpack.c.bf16 %v1673_v43, %v1672_v42  ;;  %v1700_v42 = vld [vmem:[#allocation10 + $0xe0] sm:$0xff]  ;;  %v1701_v43 = vld [vmem:[#allocation10 + $0xe8] sm:$0xff] }
  0xbd   :  { %2387 = vmatprep.subr.msk.bf16.mxu0 %vm399_vm1, %v2380_v48  ;;  %2390 = vmatprep.subr.msk.bf16.mxu1 %vm399_vm1, %v2382_v50  ;;  %v2609_v48 = vpack.c.bf16 %v1705_v44, %v1704_v27  ;;  %v1674_v50 = vld [vmem:[#allocation10 + $0x10] sm:$0xff]  ;;  %v2611_v53 = vpack.c.bf16 %v1723_v28, %v1722_v47  ;;  %v1732_v27 = vld [vmem:[#allocation10 + $0x1e0] sm:$0xff]  ;;  %v1733_v44 = vld [vmem:[#allocation10 + $0x1e8] sm:$0xff]  ;;  %v2599_v47 = vpack.c.bf16 %v1701_v43, %v1700_v42 }
  0xbe   :  { %v1684_v28 = vld [vmem:[#allocation10 + $0x60] sm:$0xff]  ;;  %v1786_v43 = vld [vmem:[#allocation10 + $0x390] sm:$0xff] }
  0xc0   :  { %1331 = vmatpush1.bf16.msra.mxu0 %v1299_v45  ;;  %1384 = vmatpush1.bf16.msra.mxu1 %v1305_v46  ;;  %v1693_v45 = vld [vmem:[#allocation10 + $0xa8] sm:$0xff] }
  0xc1   :  { %1428 = vmatprep.subr.bf16.mxu0 %v2352_v56  ;;  %1481 = vmatprep.subr.bf16.mxu1 %v2354_v57  ;;  %v1724_v56 = vld [vmem:[#allocation10 + $0x1a0] sm:$0xff]  ;;  %v1725_v46 = vld [vmem:[#allocation10 + $0x1a8] sm:$0xff]  ;;  %v2581_v57 = vpack.c.bf16 %v1675_v51, %v1674_v50  ;;  %v2583_v60 = vpack.c.bf16 %v1693_v45, %v1692_v55  ;;  %v1734_v55 = vld [vmem:[#allocation10 + $0x1f0] sm:$0xff] }
  0xc2   :  { %v1717_v50 = vld [vmem:[#allocation10 + $0x168] sm:$0xff] }
  0xc3   :  { %2388 = vmatmul.mubr.msk.bf16.vlgmr.msra.gmra.mrb[0].mxu0 %vm392_vm2, %v3128_v58  ;;  %2391 = vmatmul.mubr.msk.bf16.vlgmr.msra.gmra.mrb[0].mxu1 %vm392_vm2, %v3128_v58 }
  0xc4   :  { %1429 = vmatpush1.bf16.msra.mxu0 %v2351_v63  ;;  %1482 = vmatpush1.bf16.msra.mxu1 %v2353_v3  ;;  %v1708_v63 = vld [vmem:[#allocation10 + $0x120] sm:$0xff]  ;;  %v2615_v3 = vpack.c.bf16 %v1725_v46, %v1724_v56  ;;  %v1735_v56 = vld [vmem:[#allocation10 + $0x1f8] sm:$0xff]  ;;  %v1686_v46 = vld [vmem:[#allocation10 + $0x70] sm:$0xff] }
  0xc5   :  { %1430 = vmatprep.subr.bf16.mxu0 %v2360_v4  ;;  %1483 = vmatprep.subr.bf16.mxu1 %v2362_v5  ;;  %v1709_v4 = vld [vmem:[#allocation10 + $0x128] sm:$0xff]  ;;  %v1694_v5 = vld [vmem:[#allocation10 + $0xb0] sm:$0xff] }
  0xc6   :  { %1364 = vmatprep.mubr.bf16.mxu0 %v2962_v0  ;;  %1417 = vmatprep.mubr.bf16.mxu1 %v2962_v0 }
  0xc8   :  { %1431 = vmatpush1.bf16.msra.mxu0 %v2359_v10  ;;  %1484 = vmatpush1.bf16.msra.mxu1 %v2361_v11  ;;  %v1678_v10 = vld [vmem:[#allocation10 + $0x30] sm:$0xff]  ;;  %v1679_v11 = vld [vmem:[#allocation10 + $0x38] sm:$0xff] }
  0xc9   :  { %1432 = vmatprep.subr.bf16.mxu0 %v2368_v12  ;;  %1485 = vmatprep.subr.bf16.mxu1 %v2370_v13  ;;  %v1710_v12 = vld [vmem:[#allocation10 + $0x130] sm:$0xff]  ;;  %v2619_v13 = vpack.c.bf16 %v1727_v7, %v1726_v6  ;;  %v1785_v6 = vld [vmem:[#allocation10 + $0x388] sm:$0xff] }
  0xcb   :  { %2389 = vmatmul.mubr.msk.bf16.gmra.mrb[4].mxu0 %vm392_vm2, %v3134_v2  ;;  %2392 = vmatmul.mubr.msk.bf16.gmra.mrb[4].mxu1 %vm392_vm2, %v3134_v2 }
  0xcc   :  { %1433 = vmatpush1.bf16.msra.mxu0 %v2367_v18  ;;  %1486 = vmatpush1.bf16.msra.mxu1 %v2369_v1  ;;  %v1729_v18 = vld [vmem:[#allocation10 + $0x1c8] sm:$0xff]  ;;  %v2589_v1 = vpack.c.bf16 %v1679_v11, %v1678_v10  ;;  %v3214_v10 = vld [vmem:[#allocation9] sm:$0xff] }
  0xcd   :  { %1434 = vmatprep.subr.bf16.mxu0 %v2376_v19  ;;  %1487 = vmatprep.subr.bf16.mxu1 %v2378_v20  ;;  %v2621_v19 = vpack.c.bf16 %v1711_v14, %v1710_v12  ;;  %v2591_v20 = vpack.c.bf16 %v1697_v16, %v1696_v15 }
  0xce   :  { %1460 = vmatprep.mubr.bf16.mxu0 %v2962_v0  ;;  %1513 = vmatprep.mubr.bf16.mxu1 %v2962_v0 }
  0xd0   :  { %1435 = vmatpush1.bf16.msra.mxu0 %v2375_v23  ;;  %1488 = vmatpush1.bf16.msra.mxu1 %v2377_v24  ;;  %v1712_v23 = vld [vmem:[#allocation10 + $0x140] sm:$0xff]  ;;  %v2623_v24 = vpack.c.bf16 %v1729_v18, %v1728_v17 }
  0xd1   :  { %2393 = vmatprep.subr.msk.bf16.mxu0 %vm399_vm1, %v2384_v26  ;;  %2396 = vmatprep.subr.msk.bf16.mxu1 %vm399_vm1, %v2386_v32  ;;  %v1713_v26 = vld [vmem:[#allocation10 + $0x148] sm:$0xff]  ;;  %v1699_v32 = vld [vmem:[#allocation10 + $0xd8] sm:$0xff] }
  0xd2   :  { %v2625_v36 = vpack.c.bf16 %v1713_v26, %v1712_v23  ;;  %v2595_v37 = vpack.c.bf16 %v1699_v32, %v1698_v29  ;;  %v1768_v23 = vld [vmem:[#allocation10 + $0x300] sm:$0xff] }
  0xd4   :  { %1437 = vmatpush1.bf16.msra.mxu0 %v1311_v25  ;;  %1490 = vmatpush1.bf16.msra.mxu1 %v1317_v40  ;;  %v1683_v25 = vld [vmem:[#allocation10 + $0x58] sm:$0xff]  ;;  %v2627_v40 = vpack.c.bf16 %v1731_v35, %v1730_v33 }
  0xd5   :  { %2576 = vmatprep.subr.bf16.mxu0 %v2575_v39  ;;  %2608 = vmatprep.subr.bf16.mxu1 %v2607_v41  ;;  %v1714_v39 = vld [vmem:[#allocation10 + $0x150] sm:$0xff]  ;;  %v1715_v41 = vld [vmem:[#allocation10 + $0x158] sm:$0xff]  ;;  %v2597_v30 = vpack.c.bf16 %v1683_v25, %v1682_v38 }
  0xd6   :  { %v2629_v31 = vpack.c.bf16 %v1715_v41, %v1714_v39  ;;  %v1755_v38 = vld [vmem:[#allocation10 + $0x298] sm:$0xff] }
  0xd7   :  { %2394 = vmatmul.mubr.msk.bf16.vlgmr.msra.gmra.mrb[8].mxu0 %vm392_vm2, %v3128_v58  ;;  %2397 = vmatmul.mubr.msk.bf16.vlgmr.msra.gmra.mrb[8].mxu1 %vm392_vm2, %v3128_v58  ;;  %v1695_v58 = vld [vmem:[#allocation10 + $0xb8] sm:$0xff] }
  0xd8   :  { %1470 = vmatprep.mubr.bf16.mxu0 %v2962_v0  ;;  %1523 = vmatprep.mubr.bf16.mxu1 %v2962_v0  ;;  %v2617_v0 = vpack.c.bf16 %v1709_v4, %v1708_v63  ;;  %v2587_v9 = vpack.c.bf16 %v1695_v58, %v1694_v5  ;;  %v2637_v63 = vpack.c.bf16 %v1719_v62, %v1718_v61  ;;  %v1753_v4 = vld [vmem:[#allocation10 + $0x288] sm:$0xff]  ;;  %v1784_v5 = vld [vmem:[#allocation10 + $0x380] sm:$0xff] }
  0xd9   :  { %2578 = vmatpush3.bf16.msra.mxu0 %v2577_v34  ;;  %2610 = vmatpush3.bf16.msra.mxu1 %v2609_v48  ;;  %v1685_v34 = vld [vmem:[#allocation10 + $0x68] sm:$0xff]  ;;  %v2631_v48 = vpack.c.bf16 %v1733_v44, %v1732_v27  ;;  %v2671_v7 = vpack.c.bf16 %v1785_v6, %v1784_v5  ;;  %v1787_v27 = vld [vmem:[#allocation10 + $0x398] sm:$0xff]  ;;  %v3239_v61 = vld [vmem:[#allocation10 + $0x220] sm:$0xff] }
  0xda   :  { %2580 = vmatprep.subr.bf16.mxu0 %v2579_v49  ;;  %2612 = vmatprep.subr.bf16.mxu1 %v2611_v53  ;;  %v1716_v49 = vld [vmem:[#allocation10 + $0x160] sm:$0xff]  ;;  %v2601_v51 = vpack.c.bf16 %v1685_v34, %v1684_v28  ;;  %v1702_v53 = vld [vmem:[#allocation10 + $0xf0] sm:$0xff]  ;;  %v1739_v34 = vld [vmem:[#allocation10 + $0x218] sm:$0xff] }
  0xdb   :  { %v2633_v52 = vpack.c.bf16 %v1717_v50, %v1716_v49  ;;  %v2603_v45 = vpack.c.bf16 %v1703_v54, %v1702_v53  ;;  %v1738_v28 = vld [vmem:[#allocation10 + $0x210] sm:$0xff]  ;;  %v1771_v53 = vld [vmem:[#allocation10 + $0x318] sm:$0xff]  ;;  %v1756_v54 = vld [vmem:[#allocation10 + $0x2a0] sm:$0xff] }
  0xdc   :  { %v1741_v62 = vld [vmem:[#allocation10 + $0x228] sm:$0xff] }
  0xdd   :  { %2582 = vmatpush3.bf16.msra.mxu0 %v2581_v57  ;;  %2614 = vmatpush3.bf16.msra.mxu1 %v2613_v59  ;;  %v1687_v57 = vld [vmem:[#allocation10 + $0x78] sm:$0xff]  ;;  %v2635_v59 = vpack.c.bf16 %v1735_v56, %v1734_v55  ;;  %v1757_v55 = vld [vmem:[#allocation10 + $0x2a8] sm:$0xff]  ;;  %v2675_v56 = vpack.c.bf16 %v1787_v27, %v1786_v43 }
  0xde   :  { %2584 = vmatprep.subr.bf16.mxu0 %v2583_v60  ;;  %2616 = vmatprep.subr.bf16.mxu1 %v2615_v3  ;;  %v2605_v60 = vpack.c.bf16 %v1687_v57, %v1686_v46  ;;  %v1752_v3 = vld [vmem:[#allocation10 + $0x280] sm:$0xff]  ;;  %v1789_v57 = vld [vmem:[#allocation10 + $0x3a8] sm:$0xff] }
  0xdf   :  { %2395 = vmatmul.mubr.msk.bf16.gmra.mrb[12].mxu0 %vm392_vm2, %v3134_v2  ;;  %2398 = vmatmul.mubr.msk.bf16.gmra.mrb[12].mxu1 %vm392_vm2, %v3134_v2  ;;  %v2593_v2 = vpack.c.bf16 %v1681_v22, %v1680_v21  ;;  %v2639_v58 = vpack.c.bf16 %v1753_v4, %v1752_v3  ;;  %v1737_v22 = vld [vmem:[#allocation10 + $0x208] sm:$0xff]  ;;  %v1788_v46 = vld [vmem:[#allocation10 + $0x3a0] sm:$0xff] }
  0xe1   :  { %2586 = vmatpush3.bf16.msra.mxu0 %v2585_v8  ;;  %2618 = vmatpush3.bf16.msra.mxu1 %v2617_v0  ;;  %v1568_v8 = vlaneseq }
  0xe2   :  { %2588 = vmatprep.subr.bf16.mxu0 %v2587_v9  ;;  %2620 = vmatprep.subr.bf16.mxu1 %v2619_v13 }
  0xe3   :  { %v3211_v0 = vshrl.u32 %v1568_v8, 7 }
  0xe5   :  { %2590 = vmatpush3.bf16.msra.mxu0 %v2589_v1  ;;  %2622 = vmatpush3.bf16.msra.mxu1 %v2621_v19  ;;  %v1570_v9 = vsub.s32 0, %v3211_v0  ;;  %v1578_v11 = vsub.s32 2, %v3211_v0  ;;  %v1574_v12 = vsub.s32 1, %v3211_v0  ;;  %v1582_v13 = vsub.s32 3, %v3211_v0  ;;  %v1736_v1 = vld [vmem:[#allocation10 + $0x200] sm:$0xff] }
  0xe6   :  { %2592 = vmatprep.subr.bf16.mxu0 %v2591_v20  ;;  %2624 = vmatprep.subr.bf16.mxu1 %v2623_v24  ;;  %v1769_v24 = vld [vmem:[#allocation10 + $0x308] sm:$0xff]  ;;  %v2641_v41 = vpack.c.bf16 %v1737_v22, %v1736_v1 }
  0xe7   :  { %v3220_v14 = vrot.slane %v3214_v10, %v1570_v9  ;;  %v3223_v15 = vrot.slane %v3214_v10, %v1578_v11  ;;  %v3226_v16 = vrot.slane %v3214_v10, %v1574_v12  ;;  %v3229_v17 = vrot.slane %v3214_v10, %v1582_v13  ;;  %v1773_v9 = vld [vmem:[#allocation10 + $0x328] sm:$0xff]  ;;  %v3244_v11 = vld [vmem:[#allocation10 + $0x2b0] sm:$0xff]  ;;  %v1759_v12 = vld [vmem:[#allocation10 + $0x2b8] sm:$0xff] }
  0xe8   :  { %v2673_v42 = vpack.c.bf16 %v1769_v24, %v1768_v23 }
  0xe9   :  { %2594 = vmatpush3.bf16.msra.mxu0 %v2593_v2  ;;  %2626 = vmatpush3.bf16.msra.mxu1 %v2625_v36 }
  0xea   :  { %2596 = vmatprep.subr.bf16.mxu0 %v2595_v37  ;;  %2628 = vmatprep.subr.bf16.mxu1 %v2627_v40  ;;  %v1754_v37 = vld [vmem:[#allocation10 + $0x290] sm:$0xff] }
  0xed   :  { %2598 = vmatpush3.bf16.msra.mxu0 %v2597_v30  ;;  %2630 = vmatpush3.bf16.msra.mxu1 %v2629_v31 }
  0xee   :  { %2600 = vmatprep.subr.bf16.mxu0 %v2599_v47  ;;  %2632 = vmatprep.subr.bf16.mxu1 %v2631_v48  ;;  %v1770_v48 = vld [vmem:[#allocation10 + $0x310] sm:$0xff] }
  0xef   :  { %v2677_v6 = vpack.c.bf16 %v1771_v53, %v1770_v48  ;;  %v1792_v48 = vld [vmem:[#allocation10 + $0x3c0] sm:$0xff] }
  0xf0   :  { %v1744_v53 = vld [vmem:[#allocation10 + $0x240] sm:$0xff] }
  0xf1   :  { %2602 = vmatpush3.bf16.msra.mxu0 %v2601_v51  ;;  %2634 = vmatpush3.bf16.msra.mxu1 %v2633_v52  ;;  %v2643_v52 = vpack.c.bf16 %v1755_v38, %v1754_v37  ;;  %v1791_v37 = vld [vmem:[#allocation10 + $0x3b8] sm:$0xff] }
  0xf2   :  { %2604 = vmatprep.subr.bf16.mxu0 %v2603_v45  ;;  %2636 = vmatprep.subr.bf16.mxu1 %v2635_v59 }
  0xf5   :  { %2606 = vmatpush3.bf16.msra.mxu0 %v2605_v60  ;;  %2638 = vmatpush3.bf16.msra.mxu1 %v2637_v63  ;;  %v2645_v60 = vpack.c.bf16 %v1739_v34, %v1738_v28  ;;  %v3241_v63 = vld [vmem:[#allocation10 + $0x320] sm:$0xff]  ;;  %v1761_v28 = vld [vmem:[#allocation10 + $0x2c8] sm:$0xff] }
  0xf6   :  { %2640 = vmatprep.subr.bf16.mxu0 %v2639_v58  ;;  %2672 = vmatprep.subr.bf16.mxu1 %v2671_v7  ;;  %v2647_v7 = vpack.c.bf16 %v1757_v55, %v1756_v54  ;;  %v1745_v54 = vld [vmem:[#allocation10 + $0x248] sm:$0xff]  ;;  %v1776_v55 = vld [vmem:[#allocation10 + $0x340] sm:$0xff] }
 0x196   :  { %v1356_v18 = vpop.f32.mrb[0].mxu0  ;;  %v1409_v20 = vpop.f32.mrb[0].mxu1 }
 0x197   :  { %v1608_v19 = vadd.f32 %v3220_v14, %v1356_v18  ;;  %v1358_v21 = vpop.f32.mrb[1].mxu0  ;;  %v1610_v26 = vadd.f32 %v3223_v15, %v1409_v20  ;;  %v1411_v32 = vpop.f32.mrb[1].mxu1 }
 0x198   :  { %v1609_v29 = vadd.f32 %v3226_v16, %v1358_v21  ;;  %v1360_v33 = vpop.f32.mrb[2].mxu0  ;;  %v1611_v35 = vadd.f32 %v3229_v17, %v1411_v32  ;;  %v1413_v2 = vpop.f32.mrb[2].mxu1  ;;  %v2679_v21 = vpack.c.bf16 %v1789_v57, %v1788_v46  ;;  %v1777_v57 = vld [vmem:[#allocation10 + $0x348] sm:$0xff] }
 0x199   :  { %v1362_v36 = vpop.f32.mrb[3].mxu0  ;;  %v1415_v40 = vpop.f32.mrb[3].mxu1  ;;  %v1640_v44 = vmax.f32 %v1608_v19, 0.0  ;;  %v1616_v31 = vadd.f32 %v3220_v14, %v1360_v33  ;;  %v1642_v49 = vmax.f32 %v1610_v26, 0.0  ;;  %v1618_v50 = vadd.f32 %v3223_v15, %v1413_v2 }
 0x19a   :  { %v1641_v25 = vmax.f32 %v1609_v29, 0.0  ;;  %v1617_v39 = vadd.f32 %v3226_v16, %v1362_v36  ;;  %v1643_v30 = vmax.f32 %v1611_v35, 0.0  ;;  %v1619_v47 = vadd.f32 %v3229_v17, %v1415_v40  ;;  %v1790_v36 = vld [vmem:[#allocation10 + $0x3b0] sm:$0xff] }
 0x19b   :  { %v1648_v3 = vmax.f32 %v1616_v31, 0.0  ;;  %v1650_v13 = vmax.f32 %v1618_v50, 0.0  ;;  %v2649_v26 = vpack.c.bf16 %v1741_v62, %v3239_v61  ;;  %v2681_v35 = vpack.c.bf16 %v1773_v9, %v3241_v63  ;;  %v1794_v62 = vld [vmem:[#allocation10 + $0x3d0] sm:$0xff]  ;;  %v1795_v63 = vld [vmem:[#allocation10 + $0x3d8] sm:$0xff] }
 0x19c   :  { %v1649_v51 = vmax.f32 %v1617_v39, 0.0  ;;  %1864 = vmatprep.mubr.f32.mxu0 %v1641_v25  ;;  %v1651_v45 = vmax.f32 %v1619_v47, 0.0  ;;  %1949 = vmatprep.mubr.f32.mxu1 %v1643_v30  ;;  %v2651_v2 = vpack.c.bf16 %v1759_v12, %v3244_v11  ;;  %v1775_v30 = vld [vmem:[#allocation10 + $0x338] sm:$0xff]  ;;  %v1590_v31 = vsub.s32 5, %v3211_v0  ;;  %v1760_v47 = vld [vmem:[#allocation10 + $0x2c0] sm:$0xff]  ;;  %v1746_v9 = vld [vmem:[#allocation10 + $0x250] sm:$0xff] }
 0x19d   :  { %1865 = vmatmul.mubr.f32.vlgmr.msra.gmra.mrb[16].mxu0 %v1640_v44  ;;  %1950 = vmatmul.mubr.f32.vlgmr.msra.gmra.mrb[16].mxu1 %v1642_v49  ;;  %v1793_v49 = vld [vmem:[#allocation10 + $0x3c8] sm:$0xff]  ;;  %v1747_v11 = vld [vmem:[#allocation10 + $0x258] sm:$0xff]  ;;  %v1778_v12 = vld [vmem:[#allocation10 + $0x350] sm:$0xff] }
 0x19e   :  { %2642 = vmatpush3.bf16.msra.mxu0 %v2641_v41  ;;  %v1366_v59 = vpop.f32.mrb[4].mxu0  ;;  %2674 = vmatpush3.bf16.msra.mxu1 %v2673_v42  ;;  %v1419_v5 = vpop.f32.mrb[4].mxu1  ;;  %v1742_v41 = vld [vmem:[#allocation10 + $0x230] sm:$0xff]  ;;  %v1743_v42 = vld [vmem:[#allocation10 + $0x238] sm:$0xff]  ;;  %v2687_v46 = vpack.c.bf16 %v1793_v49, %v1792_v48 }
 0x19f   :  { %v1624_v4 = vadd.f32 %v3220_v14, %v1366_v59  ;;  %1869 = vmatprep.mubr.f32.mxu0 %v1649_v51  ;;  %v1368_v58 = vpop.f32.mrb[5].mxu0  ;;  %v1626_v18 = vadd.f32 %v3223_v15, %v1419_v5  ;;  %1954 = vmatprep.mubr.f32.mxu1 %v1651_v45  ;;  %v1421_v19 = vpop.f32.mrb[5].mxu1  ;;  %v2653_v50 = vpack.c.bf16 %v1743_v42, %v1742_v41  ;;  %v1762_v59 = vld [vmem:[#allocation10 + $0x2d0] sm:$0xff]  ;;  %v1780_v41 = vld [vmem:[#allocation10 + $0x360] sm:$0xff]  ;;  %v1594_v42 = vsub.s32 6, %v3211_v0 }
 0x1a0   :  { %v1625_v1 = vadd.f32 %v3226_v16, %v1368_v58  ;;  %v1370_v20 = vpop.f32.mrb[6].mxu0  ;;  %2644 = vmatprep.subr.bf16.mxu0 %v2643_v52  ;;  %v1627_v22 = vadd.f32 %v3229_v17, %v1421_v19  ;;  %v1423_v23 = vpop.f32.mrb[6].mxu1  ;;  %2676 = vmatprep.subr.bf16.mxu1 %v2675_v56  ;;  %v2655_v52 = vpack.c.bf16 %v1761_v28, %v1760_v47 }
 0x1a1   :  { %v1372_v24 = vpop.f32.mrb[7].mxu0  ;;  %1870 = vmatmul.mubr.f32.gmra.mrb[18].mxu0 %v1648_v3  ;;  %v1425_v33 = vpop.f32.mrb[7].mxu1  ;;  %1955 = vmatmul.mubr.f32.gmra.mrb[18].mxu1 %v1650_v13  ;;  %v1656_v38 = vmax.f32 %v1624_v4, 0.0  ;;  %v1632_v39 = vadd.f32 %v3220_v14, %v1370_v20  ;;  %v1658_v43 = vmax.f32 %v1626_v18, 0.0  ;;  %v1634_v27 = vadd.f32 %v3223_v15, %v1423_v23  ;;  %v1779_v20 = vld [vmem:[#allocation10 + $0x358] sm:$0xff] }
 0x1a2   :  { %v1657_v29 = vmax.f32 %v1625_v1, 0.0  ;;  %v1633_v32 = vadd.f32 %v3226_v16, %v1372_v24  ;;  %2646 = vmatpush3.bf16.msra.mxu0 %v2645_v60  ;;  %v1659_v25 = vmax.f32 %v1627_v22, 0.0  ;;  %v1635_v40 = vadd.f32 %v3229_v17, %v1425_v33  ;;  %2678 = vmatpush3.bf16.msra.mxu1 %v2677_v6  ;;  %v1774_v16 = vld [vmem:[#allocation10 + $0x330] sm:$0xff]  ;;  %v1763_v60 = vld [vmem:[#allocation10 + $0x2d8] sm:$0xff]  ;;  %v1765_v22 = vld [vmem:[#allocation10 + $0x2e8] sm:$0xff] }
 0x1a3   :  { %2648 = vmatprep.subr.bf16.mxu0 %v2647_v7  ;;  %2680 = vmatprep.subr.bf16.mxu1 %v2679_v21  ;;  %v2683_v14 = vpack.c.bf16 %v1791_v37, %v1790_v36  ;;  %v1598_v17 = vsub.s32 7, %v3211_v0  ;;  %v1664_v15 = vmax.f32 %v1632_v39, 0.0  ;;  %v2685_v51 = vpack.c.bf16 %v1775_v30, %v1774_v16  ;;  %v1764_v21 = vld [vmem:[#allocation10 + $0x2e0] sm:$0xff]  ;;  %v1798_v30 = vld [vmem:[#allocation10 + $0x3f0] sm:$0xff] }
 0x1a4   :  { %v1665_v44 = vmax.f32 %v1633_v32, 0.0  ;;  %1874 = vmatprep.mubr.f32.mxu0 %v1657_v29  ;;  %v1667_v34 = vmax.f32 %v1635_v40, 0.0  ;;  %1959 = vmatprep.mubr.f32.mxu1 %v1659_v25  ;;  %v1666_v45 = vmax.f32 %v1634_v27, 0.0  ;;  %v3259_v56 = vrot.slane %v3214_v10, %v1590_v31  ;;  %v1796_v29 = vld [vmem:[#allocation10 + $0x3e0] sm:$0xff]  ;;  %v1797_v32 = vld [vmem:[#allocation10 + $0x3e8] sm:$0xff]  ;;  %v1766_v27 = vld [vmem:[#allocation10 + $0x2f0] sm:$0xff] }
 0x1a5   :  { %1875 = vmatmul.mubr.f32.gmra.mrb[20].mxu0 %v1656_v38  ;;  %1960 = vmatmul.mubr.f32.gmra.mrb[20].mxu1 %v1658_v43  ;;  %v3262_v61 = vrot.slane %v3214_v10, %v1598_v17  ;;  %v2657_v4 = vpack.c.bf16 %v1745_v54, %v1744_v53  ;;  %v2689_v6 = vpack.c.bf16 %v1777_v57, %v1776_v55  ;;  %v1586_v36 = vsub.s32 4, %v3211_v0  ;;  %v1748_v39 = vld [vmem:[#allocation10 + $0x260] sm:$0xff]  ;;  %v1749_v40 = vld [vmem:[#allocation10 + $0x268] sm:$0xff]  ;;  %v1799_v31 = vld [vmem:[#allocation10 + $0x3f8] sm:$0xff] }
 0x1a6   :  { %2650 = vmatpush3.bf16.msra.mxu0 %v2649_v26  ;;  %2682 = vmatpush3.bf16.msra.mxu1 %v2681_v35  ;;  %v2659_v7 = vpack.c.bf16 %v1763_v60, %v1762_v59  ;;  %v2691_v19 = vpack.c.bf16 %v1795_v63, %v1794_v62  ;;  %v2693_v38 = vpack.c.bf16 %v1779_v20, %v1778_v12  ;;  %v1781_v43 = vld [vmem:[#allocation10 + $0x368] sm:$0xff]  ;;  %v1782_v55 = vld [vmem:[#allocation10 + $0x370] sm:$0xff] }
 0x1a7   :  { %1879 = vmatprep.mubr.f32.mxu0 %v1665_v44  ;;  %1964 = vmatprep.mubr.f32.mxu1 %v1667_v34  ;;  %v2663_v25 = vpack.c.bf16 %v1765_v22, %v1764_v21  ;;  %v2695_v16 = vpack.c.bf16 %v1797_v32, %v1796_v29  ;;  %v1767_v44 = vld [vmem:[#allocation10 + $0x2f8] sm:$0xff]  ;;  %v2665_v28 = vpack.c.bf16 %v1749_v40, %v1748_v39 }
 0x1a8   :  { %2652 = vmatprep.subr.bf16.mxu0 %v2651_v2  ;;  %2684 = vmatprep.subr.bf16.mxu1 %v2683_v14  ;;  %v2661_v2 = vpack.c.bf16 %v1747_v11, %v1746_v9  ;;  %v1587_v34 = vrot.slane %v3214_v10, %v1586_v36  ;;  %v2697_v48 = vpack.c.bf16 %v1781_v43, %v1780_v41 }
 0x1a9   :  { %1880 = vmatmul.mubr.f32.gmra.mrb[22].mxu0 %v1664_v15  ;;  %1965 = vmatmul.mubr.f32.gmra.mrb[22].mxu1 %v1666_v45  ;;  %v2667_v49 = vpack.c.bf16 %v1767_v44, %v1766_v27  ;;  %v1751_v15 = vld [vmem:[#allocation10 + $0x278] sm:$0xff]  ;;  %v2699_v54 = vpack.c.bf16 %v1799_v31, %v1798_v30 }
 0x1aa   :  { %2654 = vmatpush3.bf16.msra.mxu0 %v2653_v50  ;;  %v3264_v3 = vpop.f32.mrb[8].mxu0  ;;  %2686 = vmatpush3.bf16.msra.mxu1 %v2685_v51  ;;  %v3266_v5 = vpop.f32.mrb[8].mxu1  ;;  %v1750_v50 = vld [vmem:[#allocation10 + $0x270] sm:$0xff]  ;;  %v1595_v51 = vrot.slane %v3214_v10, %v1594_v42  ;;  %v1783_v45 = vld [vmem:[#allocation10 + $0x378] sm:$0xff] }
 0x1ab   :  { %v1464_v58 = vpop.f32.mrb[9].mxu0  ;;  %2656 = vmatprep.subr.bf16.mxu0 %v2655_v52  ;;  %v1517_v18 = vpop.f32.mrb[9].mxu1  ;;  %2688 = vmatprep.subr.bf16.mxu1 %v2687_v46  ;;  %v2669_v60 = vpack.c.bf16 %v1751_v15, %v1750_v50  ;;  %v1612_v62 = vadd.f32 %v1587_v34, %v3264_v3  ;;  %v2701_v63 = vpack.c.bf16 %v1783_v45, %v1782_v55 }
 0x1ac   :  { %v1613_v13 = vadd.f32 %v3259_v56, %v1464_v58  ;;  %v3269_v1 = vpop.f32.mrb[10].mxu0  ;;  %v1615_v23 = vadd.f32 %v3262_v61, %v1517_v18  ;;  %v3272_v24 = vpop.f32.mrb[10].mxu1 }
 0x1ad   :  { %v1468_v26 = vpop.f32.mrb[11].mxu0  ;;  %v1521_v35 = vpop.f32.mrb[11].mxu1  ;;  %v1622_v11 = vadd.f32 %v1595_v51, %v3272_v24 }
 0x1ae   :  { %v1645_v33 = vmax.f32 %v1613_v13, 0.0  ;;  %2658 = vmatpush3.bf16.msra.mxu0 %v2657_v4  ;;  %v1647_v37 = vmax.f32 %v1615_v23, 0.0  ;;  %2690 = vmatpush3.bf16.msra.mxu1 %v2689_v6  ;;  %v1614_v4 = vadd.f32 %v1595_v51, %v3266_v5  ;;  %v1621_v10 = vadd.f32 %v3259_v56, %v1468_v26 }
 0x1af   :  { %2660 = vmatprep.subr.bf16.mxu0 %v2659_v7  ;;  %2692 = vmatprep.subr.bf16.mxu1 %v2691_v19  ;;  %v1623_v58 = vadd.f32 %v3262_v61, %v1521_v35  ;;  %v1644_v6 = vmax.f32 %v1612_v62, 0.0  ;;  %v1620_v7 = vadd.f32 %v1587_v34, %v3269_v1  ;;  %v1654_v20 = vmax.f32 %v1622_v11, 0.0 }
 0x1b0   :  { %2034 = vmatprep.mubr.f32.mxu0 %v1645_v33  ;;  %2119 = vmatprep.mubr.f32.mxu1 %v1647_v37  ;;  %v1646_v9 = vmax.f32 %v1614_v4, 0.0  ;;  %v1653_v12 = vmax.f32 %v1621_v10, 0.0 }
 0x1b1   :  { %v1655_v13 = vmax.f32 %v1623_v58, 0.0  ;;  %v1652_v5 = vmax.f32 %v1620_v7, 0.0  ;;  %v2142_v7 = vadd.s32 8, %v3211_v0 }
 0x1b2   :  { %2662 = vmatpush3.bf16.msra.mxu0 %v2661_v2  ;;  %v1472_v47 = vpop.f32.mrb[12].mxu0  ;;  %2694 = vmatpush3.bf16.msra.mxu1 %v2693_v38  ;;  %v1525_v14 = vpop.f32.mrb[12].mxu1 }
 0x1b3   :  { %v1474_v17 = vpop.f32.mrb[13].mxu0  ;;  %2664 = vmatprep.subr.bf16.mxu0 %v2663_v25  ;;  %v1527_v52 = vpop.f32.mrb[13].mxu1  ;;  %2696 = vmatprep.subr.bf16.mxu1 %v2695_v16  ;;  %v1628_v19 = vadd.f32 %v1587_v34, %v1472_v47  ;;  %v1630_v21 = vadd.f32 %v1595_v51, %v1525_v14 }
 0x1b4   :  { %v1476_v53 = vpop.f32.mrb[14].mxu0  ;;  %v1529_v46 = vpop.f32.mrb[14].mxu1  ;;  %v1629_v3 = vadd.f32 %v3259_v56, %v1474_v17  ;;  %v1631_v18 = vadd.f32 %v3262_v61, %v1527_v52 }
 0x1b5   :  { %v1478_v57 = vpop.f32.mrb[15].mxu0  ;;  %v1531_v59 = vpop.f32.mrb[15].mxu1  ;;  %v1660_v26 = vmax.f32 %v1628_v19, 0.0  ;;  %v1636_v29 = vadd.f32 %v1587_v34, %v1476_v53  ;;  %v1662_v32 = vmax.f32 %v1630_v21, 0.0  ;;  %v1638_v33 = vadd.f32 %v1595_v51, %v1529_v46 }
 0x1b6   :  { %2666 = vmatpush3.bf16.msra.mxu0 %v2665_v28  ;;  %2698 = vmatpush3.bf16.msra.mxu1 %v2697_v48  ;;  %v1661_v22 = vmax.f32 %v1629_v3, 0.0  ;;  %v1637_v1 = vadd.f32 %v3259_v56, %v1478_v57  ;;  %v1663_v23 = vmax.f32 %v1631_v18, 0.0  ;;  %v1639_v24 = vadd.f32 %v3262_v61, %v1531_v59 }
 0x1b7   :  { %2668 = vmatprep.subr.bf16.mxu0 %v2667_v49  ;;  %2700 = vmatprep.subr.bf16.mxu1 %v2699_v54  ;;  %v1668_v36 = vmax.f32 %v1636_v29, 0.0  ;;  %v1670_v37 = vmax.f32 %v1638_v33, 0.0  ;;  %v2144_v59 = vand.u32 127, %v1568_v8 }
 0x1b8   :  { %v1669_v35 = vmax.f32 %v1637_v1, 0.0  ;;  %v1671_v2 = vmax.f32 %v1639_v24, 0.0 }
 0x1b9   :  { %vm2145_vm4 = vcmp.eq.s32.totalorder %v3211_v0, %v2144_v59  ;;  %vm2146_vm6 = vcmp.eq.s32.totalorder %v2142_v7, %v2144_v59 }
 0x1ba   :  { %2670 = vmatpush3.bf16.msra.mxu0 %v2669_v60  ;;  %2702 = vmatpush3.bf16.msra.mxu1 %v2701_v63 }
 0x1bd   :  { %2035 = vmatmul.mubr.f32.vlgmr.msra.gmra.mrb[24].mxu0 %v1644_v6  ;;  %2120 = vmatmul.mubr.f32.vlgmr.msra.gmra.mrb[24].mxu1 %v1646_v9 }
 0x1be   :  { %2039 = vmatprep.mubr.f32.mxu0 %v1653_v12  ;;  %2124 = vmatprep.mubr.f32.mxu1 %v1655_v13 }
 0x1c1   :  { %2040 = vmatmul.mubr.f32.gmra.mrb[26].mxu0 %v1652_v5  ;;  %2125 = vmatmul.mubr.f32.gmra.mrb[26].mxu1 %v1654_v20 }
 0x1c2   :  { %2044 = vmatprep.mubr.f32.mxu0 %v1661_v22  ;;  %2129 = vmatprep.mubr.f32.mxu1 %v1663_v23 }
 0x1c5   :  { %2045 = vmatmul.mubr.f32.gmra.mrb[28].mxu0 %v1660_v26  ;;  %2130 = vmatmul.mubr.f32.gmra.mrb[28].mxu1 %v1662_v32 }
 0x1c6   :  { %2049 = vmatprep.mubr.f32.mxu0 %v1669_v35  ;;  %2134 = vmatprep.mubr.f32.mxu1 %v1671_v2 }
 0x1c9   :  { %2050 = vmatmul.mubr.f32.gmra.mrb[30].mxu0 %v1668_v36  ;;  %2135 = vmatmul.mubr.f32.gmra.mrb[30].mxu1 %v1670_v37 }
 0x270   :  { %v2431_v56 = vpop.f32.mrb[16].mxu0  ;;  %v2475_v61 = vpop.f32.mrb[16].mxu1 }
 0x271   :  { %v2432_v38 = vpop.f32.mrb[17].mxu0  ;;  %v2476_v39 = vpop.f32.mrb[17].mxu1 }
 0x272   :  { %v2433_v25 = vadd.f32 %v2432_v38, %v2431_v56  ;;  %v2477_v40 = vadd.f32 %v2476_v39, %v2475_v61 }
 0x274   :  { %v2434_v41 = vpop.f32.mrb[18].mxu0  ;;  %v1952_v42 = vadd.f32 %v2477_v40, %v2433_v25  ;;  %v2478_v16 = vpop.f32.mrb[18].mxu1 }
 0x275   :  { %v2435_v43 = vpop.f32.mrb[19].mxu0  ;;  %v2479_v44 = vpop.f32.mrb[19].mxu1 }
 0x276   :  { %v2436_v27 = vadd.f32 %v2435_v43, %v2434_v41  ;;  %v2480_v30 = vadd.f32 %v2479_v44, %v2478_v16 }
 0x278   :  { %v2437_v31 = vpop.f32.mrb[20].mxu0  ;;  %v1957_v47 = vadd.f32 %v2480_v30, %v2436_v27  ;;  %v2481_v28 = vpop.f32.mrb[20].mxu1 }
 0x279   :  { %v2438_v34 = vpop.f32.mrb[21].mxu0  ;;  %v2482_v17 = vpop.f32.mrb[21].mxu1 }
 0x27a   :  { %v2439_v14 = vadd.f32 %v2438_v34, %v2437_v31  ;;  %v2483_v48 = vadd.f32 %v2482_v17, %v2481_v28 }
 0x27c   :  { %v2440_v49 = vpop.f32.mrb[22].mxu0  ;;  %v1962_v50 = vadd.f32 %v2483_v48, %v2439_v14  ;;  %v2484_v15 = vpop.f32.mrb[22].mxu1 }
 0x27d   :  { %v2441_v51 = vpop.f32.mrb[23].mxu0  ;;  %v2485_v53 = vpop.f32.mrb[23].mxu1 }
 0x27e   :  { %v2442_v52 = vadd.f32 %v2441_v51, %v2440_v49  ;;  %v2486_v54 = vadd.f32 %v2485_v53, %v2484_v15  ;;  %v2183_v15 = vstv %s3320_s4 }
 0x280   :  { %v1967_v55 = vadd.f32 %v2486_v54, %v2442_v52  ;;  %v2191_v54 = vld [vmem:[#allocation12] sm:$0x3] }
 0x290   :  { %v2519_v45 = vpop.f32.mrb[24].mxu0  ;;  %v2563_v46 = vpop.f32.mrb[24].mxu1 }
 0x291   :  { %v2520_v57 = vpop.f32.mrb[25].mxu0  ;;  %v2564_v62 = vpop.f32.mrb[25].mxu1 }
 0x292   :  { %v2521_v60 = vadd.f32 %v2520_v57, %v2519_v45  ;;  %v2565_v63 = vadd.f32 %v2564_v62, %v2563_v46  ;;  %v2194_v45 = vrot.slane %v2191_v54, 1 }
 0x294   :  { %v2037_v4 = vadd.f32 %v2521_v60, %v1952_v42  ;;  %v2522_v10 = vpop.f32.mrb[26].mxu0  ;;  %v2566_v58 = vpop.f32.mrb[26].mxu1 }
 0x295   :  { %v2523_v6 = vpop.f32.mrb[27].mxu0  ;;  %v2567_v12 = vpop.f32.mrb[27].mxu1 }
 0x296   :  { %v2122_v9 = vadd.f32 %v2565_v63, %v2037_v4  ;;  %v2524_v11 = vadd.f32 %v2523_v6, %v2522_v10  ;;  %v2568_v3 = vadd.f32 %v2567_v12, %v2566_v58  ;;  %v2963_v10 = vmov 0.0  }
 0x297   :  { %101 = vst [vmem:[#allocation2] sm:$0x1] %v2963_v10 }
 0x298   :  { %v2042_v13 = vadd.f32 %v2524_v11, %v1957_v47  ;;  %v2525_v18 = vpop.f32.mrb[28].mxu0  ;;  %v2151_v8 = vsel %vm2145_vm4, %v2122_v9, 0.0  ;;  %v2569_v5 = vpop.f32.mrb[28].mxu1 }
 0x299   :  { %v2526_v19 = vpop.f32.mrb[29].mxu0  ;;  %v2156_v20 = vsel %vm2155_vm5, %v2151_v8, 0.0  ;;  %v2570_v1 = vpop.f32.mrb[29].mxu1 }
 0x29a   :  { %v2127_v21 = vadd.f32 %v2568_v3, %v2042_v13  ;;  %v2527_v22 = vadd.f32 %v2526_v19, %v2525_v18  ;;  %2157 = vadd.xlane.f32.xlu1 %v2156_v20  ;;  %v2571_v23 = vadd.f32 %v2570_v1, %v2569_v5 }
 0x29c   :  { %v2047_v24 = vadd.f32 %v2527_v22, %v1962_v50  ;;  %v2528_v26 = vpop.f32.mrb[30].mxu0  ;;  %v2152_v29 = vsel %vm2146_vm6, %v2127_v21, 0.0  ;;  %v2572_v32 = vpop.f32.mrb[30].mxu1 }
 0x29d   :  { %v2529_v33 = vpop.f32.mrb[31].mxu0  ;;  %v2159_v35 = vsel %vm2155_vm5, %v2152_v29, 0.0  ;;  %v2573_v37 = vpop.f32.mrb[31].mxu1 }
 0x29e   :  { %v2132_v2 = vadd.f32 %v2571_v23, %v2047_v24  ;;  %v2530_v36 = vadd.f32 %v2529_v33, %v2528_v26  ;;  %2160 = vadd.xlane.f32.xlu1 %v2159_v35  ;;  %v2574_v56 = vadd.f32 %v2573_v37, %v2572_v32  ;;  %v2192_v13 = vld [vmem:[#allocation2] sm:$0x1] }
 0x2a0   :  { %v2052_v61 = vadd.f32 %v2530_v36, %v1967_v55  ;;  %v2153_v38 = vsel %vm2145_vm4, %v2132_v2, 0.0 }
 0x2a1   :  { %v2162_v25 = vsel %vm2155_vm5, %v2153_v38, 0.0 }
 0x2a2   :  { %v2137_v39 = vadd.f32 %v2574_v56, %v2052_v61  ;;  %2163 = vadd.xlane.f32.xlu0 %v2162_v25 }
 0x2a4   :  { %v2154_v40 = vsel %vm2146_vm6, %v2137_v39, 0.0 }
 0x2a5   :  { %v2165_v41 = vsel %vm2155_vm5, %v2154_v40, 0.0 }
 0x2a6   :  { %2166 = vadd.xlane.f32.xlu0 %v2165_v41 }
 0x327   :  { %v2158_v42 = vpop.xlane.xlu1 %2157 }
 0x32b   :  { %v2161_v16 = vpop.xlane.xlu1 %2160 }
 0x32c   :  { %v2168_v43 = vadd.f32 %v2161_v16, %v2158_v42 }
 0x32e   :  { %v2169_v27 = vrot.slane %v2168_v43, 4 }
 0x32f   :  { %v2164_v44 = vpop.xlane.xlu0 %2163 }
 0x330   :  { %v2170_v30 = vadd.f32 %v2169_v27, %v2168_v43 }
 0x332   :  { %v2171_v31 = vrot.slane %v2170_v30, 2 }
 0x333   :  { %v2167_v47 = vpop.xlane.xlu0 %2166 }
 0x334   :  { %v2172_v28 = vadd.f32 %v2171_v31, %v2170_v30  ;;  %v2175_v0 = vadd.f32 %v2167_v47, %v2164_v44 }
 0x336   :  { %v2176_v34 = vrot.slane %v2175_v0, 4  ;;  %v2173_v14 = vrot.slane %v2172_v28, 1 }
 0x338   :  { %v2177_v17 = vadd.f32 %v2176_v34, %v2175_v0  ;;  %v2174_v49 = vadd.f32 %v2173_v14, %v2172_v28 }
 0x33a   :  { %v2178_v48 = vrot.slane %v2177_v17, 2  ;;  %v2184_v53 = vadd.f32 %v2183_v15, %v2174_v49 }
 0x33c   :  { %v2179_v50 = vadd.f32 %v2178_v48, %v2177_v17  ;;  %v2186_v46 = vmax.f32 %v2184_v53, 0.0 }
 0x33e   :  { %v2180_v51 = vrot.slane %v2179_v50, 1  ;;  %v2197_v60 = vmul.f32 %v2191_v54, %v2186_v46 }
 0x340   :  { %v2181_v52 = vadd.f32 %v2180_v51, %v2179_v50 }
 0x342   :  { %v2185_v55 = vadd.f32 %v2183_v15, %v2181_v52 }
 0x344   :  { %v2187_v57 = vmax.f32 %v2185_v55, 0.0 }
 0x346   :  { %v2198_v59 = vmul.f32 %v2194_v45, %v2187_v57 }
 0x348   :  { %v2201_v62 = vrot.slane %v2198_v59, 7 }
 0x34a   :  { %v2203_v63 = vsel %vm2202_vm7, %v2201_v62, %v2197_v60 }
 0x34b   :  { %v2206_v4 = vsel %vm2205_vm8, %v2203_v63, 0.0 }
 0x34c   :  { %2207 = vadd.xlane.f32.xlu0 %v2206_v4 }
 0x3d9   :  { %v2208_v58 = vpop.xlane.xlu0 %2207 }
 0x3da   :  { %v2209_v6 = vrot.slane %v2208_v58, 4 }
 0x3dc   :  { %v2210_v7 = vadd.f32 %v2209_v6, %v2208_v58 }
 0x3de   :  { %v2211_v9 = vrot.slane %v2210_v7, 2 }
 0x3e0   :  { %v2212_v11 = vadd.f32 %v2211_v9, %v2210_v7 }
 0x3e2   :  { %v2213_v12 = vrot.slane %v2212_v11, 1 }
 0x3e4   :  { %v2214_v3 = vadd.f32 %v2213_v12, %v2212_v11 }
 0x3e6   :  { %2767 = vpush %v2214_v3 }
 0x417   :  { %s2768_s4 = spop %2767 }
 0x418   :  { %v2216_v18 = vstv %s2768_s4 }
 0x419   :  { %v2217_v8 = vadd.f32 %v2216_v18, %v2192_v13 }
 0x41b   :  { %2218 = vst [vmem:[#allocation2] sm:$0x1] %v2217_v8 }
 0x422   :  { %v2222_v5 = vld [vmem:[#allocation2] sm:$0x1] }
 0x423   :  { %2223 = vst [vmem:[#allocation13] sm:$0x1] %v2222_v5 }
 0x424   :  { %2932 = shalt.err (!%p2929_p2)
}
 0x425   :  { %s2933_s16 = scalar_lea.hbm %s3322_s6, 16 }
 0x426   :  { %p2934_p3 = scmp.ne.s32.totalorder %s3322_s6, %s2933_s16  ;;  %p2937_p4 = scmp.lt.u32.totalorder %s2933_s16, %s3322_s6 }
 0x428   :  { %p2939_p5 = pnand %p2937_p4, %p2934_p3 }
 0x42a   :  { %2942 = shalt.err (!%p2939_p5)
}
 0x42b   :  { %2233 = dma.vmem_to_hbm [thread:$0]  %s2231_s11, 16, %s3322_s6, [#allocation6]  }
 0x42c   :  { %2949 = dma.done.wait [#allocation6], 16  }
 0x42d   :  { %2950 = vsyncadd [#allocation6], 4294967280 }
 0x42e   :  { %2237 = vsyncpa [#allocation5], 1 }
 0x42f   :  { %2238 = vsyncpa [#allocation8], 1 }
 0x430   :  { %2239 = vsyncpa [#allocation11], 1 }
 0x431   :  { %2240 = vsyncpa [#allocation6], 1 }

</bundles_post_ra>
